<compile_context>
chip_gen: v7x
topology: tpu7x:2x2x1
jax: 0.10.0
libtpu: 0.0.40
codegen_flags: <defaults>
</compile_context>

<pallas_src>
import jax
import jax.numpy as jnp
from jax.experimental import pallas as pl
from jax.experimental.pallas import tpu as pltpu


def _round_up(x, m):
    return ((x + m - 1) // m) * m


def _make_kernel(offsets, total, n_cat, n_con, k_pad):
    """Builds the kernel with category offsets / fused layout baked in as static Python ints."""

    def kernel(cat_ref, con_ref, w_ref, out_ref):
        bt = cat_ref.shape[0]

        # Hoisted once: column index over the fused feature axis (review: no per-column iota).
        kiota = jax.lax.broadcasted_iota(jnp.int32, (bt, k_pad), 1)

        # "ones" column (row K-1 of W carries cat_bias / num_b).
        feats = (kiota == (total + n_con)).astype(jnp.float32)

        # Categorical one-hots at global positions offset[j] + id (disjoint ranges).
        for j in range(n_cat):
            g = cat_ref[:, j:j + 1] + offsets[j]                      # (Bt, 1) int32
            feats = feats + (kiota == g).astype(jnp.float32)

        # Continuous values placed at positions total + j.
        for j in range(n_con):
            sel = (kiota == (total + j)).astype(jnp.float32)
            feats = feats + sel * con_ref[:, j:j + 1]

        # Single fused MXU matmul + one lane-dense full-width store.
        out = jnp.dot(feats, w_ref[...], preferred_element_type=jnp.float32)
        out_ref[...] = out.astype(out_ref.dtype)

    return kernel


def build_fused_weight(params, cat_dims, n_con, d):
    """Host-side: fold emb / cat_bias / num_w / num_b into one block-structured weight."""
    n_cat = len(cat_dims)
    total = sum(cat_dims)
    n_tok = n_cat + n_con
    k = total + n_con + 1
    k_pad = _round_up(k, 8)                       # sublane-aligned contraction dim

    offsets = [0] * n_cat
    for j in range(1, n_cat):
        offsets[j] = offsets[j - 1] + cat_dims[j - 1]

    w = jnp.zeros((k_pad, n_tok * d), jnp.float32)
    for j, c in enumerate(cat_dims):
        cols = slice(j * d, (j + 1) * d)
        w = w.at[offsets[j]:offsets[j] + c, cols].set(
            params["emb"][offsets[j]:offsets[j] + c])
        w = w.at[k - 1, cols].set(params["cat_bias"][j])
    for j in range(n_con):
        cols = slice((n_cat + j) * d, (n_cat + j + 1) * d)
        w = w.at[total + j, cols].set(params["num_w"][j])
        w = w.at[k - 1, cols].set(params["num_b"][j])
    return w, tuple(offsets), k_pad


def fusion_tokenizer(anchor_cat, anchor_con, params, cat_dims, *, block_b=256,
                     out_dtype=jnp.float32):
    B, n_cat = anchor_cat.shape
    n_con = anchor_con.shape[1]
    total, d = params["emb"].shape
    assert n_cat == len(cat_dims) and total == sum(cat_dims)
    n_tok = n_cat + n_con

    block_b = min(block_b, B)
    assert B % block_b == 0, "batch must be divisible by block_b"

    fused_w, offsets, k_pad = build_fused_weight(params, cat_dims, n_con, d)
    kernel = _make_kernel(offsets, total, n_cat, n_con, k_pad)

    out_bytes = B * n_tok * d * jnp.dtype(out_dtype).itemsize
    cost = pl.CostEstimate(
        flops=2 * B * k_pad * n_tok * d,
        transcendentals=0,
        bytes_accessed=(anchor_cat.size * 4 + anchor_con.size * 4
                        + fused_w.size * 4 + out_bytes),
    )

    return pl.pallas_call(
        kernel,
        out_shape=jax.ShapeDtypeStruct((B, n_tok * d), out_dtype),
        grid=(B // block_b,),
        in_specs=[
            pl.BlockSpec((block_b, n_cat), lambda i: (i, 0)),        # anchor_cat tile
            pl.BlockSpec((block_b, n_con), lambda i: (i, 0)),        # anchor_con tile
            pl.BlockSpec((k_pad, n_tok * d), lambda i: (0, 0)),      # fused weight (grid-invariant)
        ],
        out_specs=pl.BlockSpec((block_b, n_tok * d), lambda i: (i, 0)),
        compiler_params=pltpu.CompilerParams(
            dimension_semantics=("parallel",),
            vmem_limit_bytes=32 * 1024 * 1024,
        ),
        cost_estimate=cost,
    )(anchor_cat, anchor_con, fused_w)


def init_params(key, cat_dims, n_con, d):
    """Deterministic init mirroring _TokenInitialization('normal'): std = d**-0.5."""
    total = sum(cat_dims)
    n_cat = len(cat_dims)
    std = d ** -0.5
    k = jax.random.split(key, 4)
    offsets = jnp.cumsum(jnp.array([0] + cat_dims[:-1], dtype=jnp.int32))[None]  # (1, n_cat)
    return dict(
        offsets=offsets,  # used by the pure-JAX reference; the kernel bakes them statically
        emb=(jax.random.normal(k[0], (total, d)) * std).astype(jnp.float32),
        cat_bias=(jax.random.normal(k[1], (n_cat, d)) * std).astype(jnp.float32),
        num_w=(jax.random.normal(k[2], (n_con, d)) * std).astype(jnp.float32),
        num_b=(jax.random.normal(k[3], (n_con, d)) * std).astype(jnp.float32),
    )


def reference(anchor_cat, anchor_con, params):
    idx = anchor_cat + params["offsets"]                        # (B, n_cat)
    x_cat = params["emb"][idx] + params["cat_bias"][None]       # (B, n_cat, d)
    x_con = anchor_con[..., None] * params["num_w"][None] + params["num_b"][None]
    x = jnp.concatenate([x_cat, x_con], axis=1)
    return x.reshape(x.shape[0], -1)


if __name__ == "__main__":
    cat_dims = [5, 7, 3]    # three categorical columns (vocab sizes)
    n_con = 5               # five continuous columns -> n_tok * d = 8 * 32 = 256 (lane-dense)
    d = 32                  # token (embedding) dim
    B = 512                 # batch: 2 grid steps of block_b=256 (even grid for v7x's 2 TCs)

    key = jax.random.PRNGKey(0)
    k_params, k_cat, k_con = jax.random.split(key, 3)
    params = init_params(k_params, cat_dims, n_con, d)

    anchor_cat = jnp.stack(
        [jax.random.randint(jax.random.fold_in(k_cat, j), (B,), 0, c)
         for j, c in enumerate(cat_dims)],
        axis=1).astype(jnp.int32)                               # (B, n_cat), valid ids
    anchor_con = jax.random.normal(k_con, (B, n_con), dtype=jnp.float32)

    out = fusion_tokenizer(anchor_cat, anchor_con, params, cat_dims, block_b=256)
    out = jax.block_until_ready(out)

    ref = reference(anchor_cat, anchor_con, params)
    assert out.shape == (B, (len(cat_dims) + n_con) * d), out.shape
    max_err = float(jnp.max(jnp.abs(out - ref)))
    assert max_err < 1e-4, max_err
    print("KERNEL_OK")
</pallas_src>

<mosaic_0001>
module attributes {stable_mosaic.version = 11 : i64} {
  func.func @kernel(%arg0: i32, %arg1: memref<256x3xi32, #tpu.memory_space<vmem>>, %arg2: memref<256x5xf32, #tpu.memory_space<vmem>>, %arg3: memref<24x256xf32, #tpu.memory_space<vmem>>, %arg4: memref<256x256xf32, #tpu.memory_space<vmem>>) attributes {dimension_semantics = [#tpu.dimension_semantics<parallel>], iteration_bounds = array<i64: 2>, scalar_prefetch = 0 : i64, scratch_operands = 0 : i64, tpu.core_type = #tpu.core_type<tc>, window_params = [{transform_indices = @transform_0, window_bounds = array<i64: 256, 3>}, {transform_indices = @transform_1, window_bounds = array<i64: 256, 5>}, {pipeline_mode = #tpu.pipeline_mode<synchronous>, transform_indices = @transform_2, window_bounds = array<i64: 24, 256>}, {transform_indices = @transform_3, window_bounds = array<i64: 256, 256>}]} {
    %0 = tpu.iota {dimensions = array<i32: 1>} : vector<256x24xi32>
    %c20_i32 = arith.constant 20 : i32
    %1 = vector.broadcast %c20_i32 : i32 to vector<256x24xi32>
    %2 = arith.cmpi eq, %0, %1 : vector<256x24xi32>
    %3 = arith.extui %2 : vector<256x24xi1> to vector<256x24xi32>
    %4 = arith.sitofp %3 : vector<256x24xi32> to vector<256x24xf32>
    %c0 = arith.constant 0 : index
    %c0_0 = arith.constant 0 : index
    %5 = vector.load %arg1[%c0, %c0_0] : memref<256x3xi32, #tpu.memory_space<vmem>>, vector<256x1xi32>
    %c0_i32 = arith.constant 0 : i32
    %6 = vector.broadcast %c0_i32 : i32 to vector<256x1xi32>
    %7 = arith.addi %5, %6 : vector<256x1xi32>
    %8 = vector.broadcast %7 : vector<256x1xi32> to vector<256x24xi32>
    %9 = arith.cmpi eq, %0, %8 : vector<256x24xi32>
    %10 = arith.extui %9 : vector<256x24xi1> to vector<256x24xi32>
    %11 = arith.sitofp %10 : vector<256x24xi32> to vector<256x24xf32>
    %12 = arith.addf %4, %11 : vector<256x24xf32>
    %c0_1 = arith.constant 0 : index
    %c1 = arith.constant 1 : index
    %13 = vector.load %arg1[%c0_1, %c1] : memref<256x3xi32, #tpu.memory_space<vmem>>, vector<256x1xi32>
    %c5_i32 = arith.constant 5 : i32
    %14 = vector.broadcast %c5_i32 : i32 to vector<256x1xi32>
    %15 = arith.addi %13, %14 : vector<256x1xi32>
    %16 = vector.broadcast %15 : vector<256x1xi32> to vector<256x24xi32>
    %17 = arith.cmpi eq, %0, %16 : vector<256x24xi32>
    %18 = arith.extui %17 : vector<256x24xi1> to vector<256x24xi32>
    %19 = arith.sitofp %18 : vector<256x24xi32> to vector<256x24xf32>
    %20 = arith.addf %12, %19 : vector<256x24xf32>
    %c0_2 = arith.constant 0 : index
    %c2 = arith.constant 2 : index
    %21 = vector.load %arg1[%c0_2, %c2] : memref<256x3xi32, #tpu.memory_space<vmem>>, vector<256x1xi32>
    %c12_i32 = arith.constant 12 : i32
    %22 = vector.broadcast %c12_i32 : i32 to vector<256x1xi32>
    %23 = arith.addi %21, %22 : vector<256x1xi32>
    %24 = vector.broadcast %23 : vector<256x1xi32> to vector<256x24xi32>
    %25 = arith.cmpi eq, %0, %24 : vector<256x24xi32>
    %26 = arith.extui %25 : vector<256x24xi1> to vector<256x24xi32>
    %27 = arith.sitofp %26 : vector<256x24xi32> to vector<256x24xf32>
    %28 = arith.addf %20, %27 : vector<256x24xf32>
    %c15_i32 = arith.constant 15 : i32
    %29 = vector.broadcast %c15_i32 : i32 to vector<256x24xi32>
    %30 = arith.cmpi eq, %0, %29 : vector<256x24xi32>
    %31 = arith.extui %30 : vector<256x24xi1> to vector<256x24xi32>
    %32 = arith.sitofp %31 : vector<256x24xi32> to vector<256x24xf32>
    %c0_3 = arith.constant 0 : index
    %c0_4 = arith.constant 0 : index
    %33 = vector.load %arg2[%c0_3, %c0_4] : memref<256x5xf32, #tpu.memory_space<vmem>>, vector<256x1xf32>
    %34 = vector.broadcast %33 : vector<256x1xf32> to vector<256x24xf32>
    %35 = arith.mulf %32, %34 : vector<256x24xf32>
    %36 = arith.addf %28, %35 : vector<256x24xf32>
    %c16_i32 = arith.constant 16 : i32
    %37 = vector.broadcast %c16_i32 : i32 to vector<256x24xi32>
    %38 = arith.cmpi eq, %0, %37 : vector<256x24xi32>
    %39 = arith.extui %38 : vector<256x24xi1> to vector<256x24xi32>
    %40 = arith.sitofp %39 : vector<256x24xi32> to vector<256x24xf32>
    %c0_5 = arith.constant 0 : index
    %c1_6 = arith.constant 1 : index
    %41 = vector.load %arg2[%c0_5, %c1_6] : memref<256x5xf32, #tpu.memory_space<vmem>>, vector<256x1xf32>
    %42 = vector.broadcast %41 : vector<256x1xf32> to vector<256x24xf32>
    %43 = arith.mulf %40, %42 : vector<256x24xf32>
    %44 = arith.addf %36, %43 : vector<256x24xf32>
    %c17_i32 = arith.constant 17 : i32
    %45 = vector.broadcast %c17_i32 : i32 to vector<256x24xi32>
    %46 = arith.cmpi eq, %0, %45 : vector<256x24xi32>
    %47 = arith.extui %46 : vector<256x24xi1> to vector<256x24xi32>
    %48 = arith.sitofp %47 : vector<256x24xi32> to vector<256x24xf32>
    %c0_7 = arith.constant 0 : index
    %c2_8 = arith.constant 2 : index
    %49 = vector.load %arg2[%c0_7, %c2_8] : memref<256x5xf32, #tpu.memory_space<vmem>>, vector<256x1xf32>
    %50 = vector.broadcast %49 : vector<256x1xf32> to vector<256x24xf32>
    %51 = arith.mulf %48, %50 : vector<256x24xf32>
    %52 = arith.addf %44, %51 : vector<256x24xf32>
    %c18_i32 = arith.constant 18 : i32
    %53 = vector.broadcast %c18_i32 : i32 to vector<256x24xi32>
    %54 = arith.cmpi eq, %0, %53 : vector<256x24xi32>
    %55 = arith.extui %54 : vector<256x24xi1> to vector<256x24xi32>
    %56 = arith.sitofp %55 : vector<256x24xi32> to vector<256x24xf32>
    %c0_9 = arith.constant 0 : index
    %c3 = arith.constant 3 : index
    %57 = vector.load %arg2[%c0_9, %c3] : memref<256x5xf32, #tpu.memory_space<vmem>>, vector<256x1xf32>
    %58 = vector.broadcast %57 : vector<256x1xf32> to vector<256x24xf32>
    %59 = arith.mulf %56, %58 : vector<256x24xf32>
    %60 = arith.addf %52, %59 : vector<256x24xf32>
    %c19_i32 = arith.constant 19 : i32
    %61 = vector.broadcast %c19_i32 : i32 to vector<256x24xi32>
    %62 = arith.cmpi eq, %0, %61 : vector<256x24xi32>
    %63 = arith.extui %62 : vector<256x24xi1> to vector<256x24xi32>
    %64 = arith.sitofp %63 : vector<256x24xi32> to vector<256x24xf32>
    %c0_10 = arith.constant 0 : index
    %c4 = arith.constant 4 : index
    %65 = vector.load %arg2[%c0_10, %c4] : memref<256x5xf32, #tpu.memory_space<vmem>>, vector<256x1xf32>
    %66 = vector.broadcast %65 : vector<256x1xf32> to vector<256x24xf32>
    %67 = arith.mulf %64, %66 : vector<256x24xf32>
    %68 = arith.addf %60, %67 : vector<256x24xf32>
    %c0_11 = arith.constant 0 : index
    %c0_12 = arith.constant 0 : index
    %69 = vector.load %arg3[%c0_11, %c0_12] : memref<24x256xf32, #tpu.memory_space<vmem>>, vector<24x256xf32>
    %cst = arith.constant dense<0.000000e+00> : vector<256x256xf32>
    %70 = tpu.matmul %68, %69, %cst {dimension_numbers = #tpu.dot_dimension_numbers<[1], [0], [0], [1], [0, 0, 1, 1], [], []>} : vector<256x24xf32>, vector<24x256xf32>, vector<256x256xf32> -> vector<256x256xf32>
    %c0_13 = arith.constant 0 : index
    %c0_14 = arith.constant 0 : index
    %71 = vector.load %arg4[%c0_13, %c0_14] : memref<256x256xf32, #tpu.memory_space<vmem>>, vector<256x256xf32>
    tpu.vector_store %arg4[%c0_13, %c0_14], %70 {strides = array<i32>} : memref<256x256xf32, #tpu.memory_space<vmem>>, vector<256x256xf32>,
    return
  }
  func.func @transform_0(%arg0: i32) -> (i32, i32) {
    %c0_i32 = arith.constant 0 : i32
    %c0_i32_0 = arith.constant 0 : i32
    return %arg0, %c0_i32 : i32, i32
  }
  func.func @transform_1(%arg0: i32) -> (i32, i32) {
    %c0_i32 = arith.constant 0 : i32
    %c0_i32_0 = arith.constant 0 : i32
    return %arg0, %c0_i32 : i32, i32
  }
  func.func @transform_2(%arg0: i32) -> (i32, i32) {
    %c0_i32 = arith.constant 0 : i32
    %c0_i32_0 = arith.constant 0 : i32
    %c0_i32_1 = arith.constant 0 : i32
    return %c0_i32, %c0_i32_0 : i32, i32
  }
  func.func @transform_3(%arg0: i32) -> (i32, i32) {
    %c0_i32 = arith.constant 0 : i32
    %c0_i32_0 = arith.constant 0 : i32
    return %arg0, %c0_i32 : i32, i32
  }
}

</mosaic_0001>

<bundles_post_ra>
// kernel: tpu_custom_call.1
= control target key start
LH: loop header
LB: loop body
LE: loop exit
PB: predicated region body
PF: predicated region fallthrough
CT: control target
= control target key end

     0   :  { %8 = vsyncpa [#allocation3], 0  ;;  %s4768_s0 = inlined_call_operand.vmem [shape: s32[512,3], index: 0, kind: input, shape index: {}]   ;;  %s4769_s1 = inlined_call_operand.vmem [shape: f32[512,5], index: 1, kind: input, shape index: {}]   ;;  %s4770_s2 = inlined_call_operand.vmem [shape: f32[24,256], index: 2, kind: input, shape index: {}]   ;;  %s4771_s3 = inlined_call_operand.hbm [shape: f32[512,256], index: 3, kind: output, shape index: {}]  }
   0x1   :  { %10 = vsyncpa [#allocation3 + $0x1], 0  ;;  %s2894_s12 = smov 0   ;;  %s2896_s13 = smov 0  }
   0x2   :  { %s2898_s14 = smov 0   ;;  %s2900_s15 = smov 0  }
   0x3 LB: > { %s2915_s16 = sadd.s32 4294967295, %s2863_s15   ;;  %s2519_s17 = sadd.s32 4294967294, %s2863_s15   ;;  %s2863_s15 = sphi %s2900_s15, %s5098_s15   ;;  %s2859_s14 = sphi %s2898_s14, %s5097_s14   ;;  %s2855_s13 = sphi %s2896_s13, %s5096_s13   ;;  %s2851_s12 = sphi %s2894_s12, %s5095_s12  }
   0x4   : > { %s2919_s18 = sadd.s32 1, %s2863_s15   ;;  %s96_s19 = sadd.s32 1, %s2859_s14 }
   0x5   : > { %s93_s20 = ssub.s32 %s2863_s15, %s2919_s18  ;;  %p106_p0 = scmp.ne.s32.totalorder %s2859_s14, %s2855_s13 }
   0x6   : > { %p94_p1 = scmp.eq.s32.totalorder %s93_s20, 0  ;;  %p107_p2 = scmp.eq.s32.totalorder %s2915_s16, 1 }
   0x7   : > { %p112_p3 = scmp.ne.s32.totalorder %s2855_s13, %s2851_s12  ;;  %p113_p4 = scmp.eq.s32.totalorder %s2519_s17, 1 }
   0x8   : > { %s2930_s21 = scalar_select %p94_p1, %s2859_s14, %s96_s19  }
   0x9   : > { %p2932_p5 = por %p107_p2, %p106_p0  ;;  %p2936_p6 = por %p113_p4, %p112_p3 }
   0xa   : > { %p2522_p7 = scmp.ge.s32.totalorder %s2863_s15, 1  ;;  %p152_p8 = scmp.lt.s32.totalorder %s2863_s15, 3 }
   0xc   : > { %p153_p9 = pnand %p2522_p7, %p152_p8 }
   0xe   : > { %156 = sbr.rel (%p153_p9) target bundleno = 1009 (0x3f1), region = 32 }
  0x15   : > { %s2524_s24 = sshll.u32 %s2915_s16, 5  ;;  %v4777_v0 = vmov 0   ;;  %v4772_v1 = vmov 0.0   ;;  %v4776_v36 = vmov 1   ;;  %s178_s26 = sand.u32 1, %s2855_s13  }
  0x16   : > { %2726 = vset.pattern.permute.xlu1 %v4777_v0  ;;  %2725 = vset.pattern.permute.xlu0 %v4777_v0  ;;  %p182_p10 = scmp.lt.s32.totalorder %s2524_s24, 63  ;;  %s2523_s27 = sshll.u32 %s178_s26, 9 }
  0x17   : > { %2173 = vmatprep.mubr.f32.mxu0 %v4772_v1  ;;  %2269 = vmatprep.mubr.f32.mxu1 %v4772_v1  ;;  %s2669_s29 = sshll.u32 %s2915_s16, 13  ;;  %s4727_s16 = scalar_lea.sflag [#allocation3], %s178_s26 }
  0x18   : > { %s5100_s24 = smov (!%p182_p10, %s2524_s24), 63  ;;  %s4719_s6 = scalar_lea.hbm %s4771_s3, %s2669_s29 }
  0x19   : > { %s2525_s25 = sshll.u32 %s5100_s24, 3  ;;  %s2871_s8 = smov [#allocation2]  }
  0x1a   : > { %s2953_s28 = scalar_lea.vmem %s4768_s0, %s2525_s25  ;;  %s3088_s4 = scalar_lea.vmem %s4769_s1, %s2525_s25 }
  0x1b   : > { %v2958_v2 = vld [vmem:[%s2953_s28 + $0x10] sm:$0xff]  ;;  %v2961_v3 = vld [vmem:[%s2953_s28] sm:$0xff]  ;;  %v2966_v4 = vld [vmem:[%s2953_s28 + $0x18] sm:$0xff]  ;;  %s2805_s9 = sshll.u32 %s2871_s8, 4  ;;  %s2806_s9 = int_to_ptr.vmem [resolvable:$false] %s2805_s9 }
  0x1c   : > { %238 = vperm.xlu1 %2726, %v2958_v2   ;;  %232 = vperm.xlu0 %2725, %v2961_v3   ;;  %v2969_v5 = vld [vmem:[%s2953_s28 + $0x8] sm:$0xff]  ;;  %v2977_v7 = vld [vmem:[%s2953_s28 + $0x20] sm:$0xff]  ;;  %v2982_v8 = vld [vmem:[%s2953_s28 + $0x38] sm:$0xff]  ;;  %v457_v38 = vadd.s32 5, %v2958_v2  ;;  %s2807_s10 = scalar_lea.vmem %s2806_s9, 16384 }
  0x1d   : > { %v2974_v6 = vld [vmem:[%s2953_s28 + $0x28] sm:$0xff]  ;;  %v2985_v9 = vld [vmem:[%s2953_s28 + $0x30] sm:$0xff]  ;;  %v2993_v11 = vld [vmem:[%s2953_s28 + $0x40] sm:$0xff]  ;;  %v456_v35 = vadd.s32 5, %v2969_v5  ;;  %v459_v40 = vadd.s32 5, %v2977_v7 }
  0x1e   : > { %v2990_v10 = vld [vmem:[%s2953_s28 + $0x48] sm:$0xff]  ;;  %v2998_v12 = vld [vmem:[%s2953_s28 + $0x58] sm:$0xff]  ;;  %v3001_v13 = vld [vmem:[%s2953_s28 + $0x50] sm:$0xff]  ;;  %v461_v42 = vadd.s32 5, %v2985_v9  ;;  %v463_v44 = vadd.s32 5, %v2993_v11 }
  0x1f   : > { %v3006_v14 = vld [vmem:[%s2953_s28 + $0x68] sm:$0xff]  ;;  %v3009_v15 = vld [vmem:[%s2953_s28 + $0x60] sm:$0xff]  ;;  %v3014_v16 = vld [vmem:[%s2953_s28 + $0x78] sm:$0xff]  ;;  %v465_v46 = vadd.s32 5, %v3001_v13 }
  0x20   : > { %241 = vperm.xlu1 %2726, %v2966_v4   ;;  %235 = vperm.xlu0 %2725, %v2969_v5   ;;  %v3017_v17 = vld [vmem:[%s2953_s28 + $0x70] sm:$0xff]  ;;  %v3022_v18 = vld [vmem:[%s2953_s28 + $0x88] sm:$0xff]  ;;  %v3025_v19 = vld [vmem:[%s2953_s28 + $0x80] sm:$0xff]  ;;  %v467_v48 = vadd.s32 5, %v3009_v15 }
  0x21   : > { %v3030_v20 = vld [vmem:[%s2953_s28 + $0x98] sm:$0xff]  ;;  %v3033_v21 = vld [vmem:[%s2953_s28 + $0x90] sm:$0xff]  ;;  %v3038_v22 = vld [vmem:[%s2953_s28 + $0xa8] sm:$0xff]  ;;  %v469_v50 = vadd.s32 5, %v3017_v17  ;;  %v471_v52 = vadd.s32 5, %v3025_v19 }
  0x22   : > { %v3041_v23 = vld [vmem:[%s2953_s28 + $0xa0] sm:$0xff]  ;;  %v3046_v24 = vld [vmem:[%s2953_s28 + $0xb8] sm:$0xff]  ;;  %v3049_v25 = vld [vmem:[%s2953_s28 + $0xb0] sm:$0xff]  ;;  %v473_v54 = vadd.s32 5, %v3033_v21 }
  0x23   : > { %v3054_v26 = vld [vmem:[%s2953_s28 + $0xc8] sm:$0xff]  ;;  %v3057_v27 = vld [vmem:[%s2953_s28 + $0xc0] sm:$0xff]  ;;  %v3062_v28 = vld [vmem:[%s2953_s28 + $0xd8] sm:$0xff]  ;;  %v475_v56 = vadd.s32 5, %v3041_v23  ;;  %v477_v58 = vadd.s32 5, %v3049_v25 }
  0x24   : > { %247 = vperm.xlu1 %2726, %v2974_v6   ;;  %244 = vperm.xlu0 %2725, %v2977_v7   ;;  %v3065_v29 = vld [vmem:[%s2953_s28 + $0xd0] sm:$0xff]  ;;  %v3070_v30 = vld [vmem:[%s2953_s28 + $0xe8] sm:$0xff]  ;;  %v3073_v31 = vld [vmem:[%s2953_s28 + $0xe0] sm:$0xff]  ;;  %v479_v60 = vadd.s32 5, %v3057_v27 }
  0x25   : > { %v3078_v32 = vld [vmem:[%s2953_s28 + $0xf8] sm:$0xff]  ;;  %v3081_v33 = vld [vmem:[%s2953_s28 + $0xf0] sm:$0xff]  ;;  %v3093_v34 = vld [vmem:[%s3088_s4] sm:$0xff]  ;;  %v481_v62 = vadd.s32 5, %v3065_v29  ;;  %s4599_s28 = scalar_lea.vmem [#allocation2], %s2523_s27 }
  0x26   : > { %v3099_v37 = vld [vmem:[%s3088_s4 + $0x18] sm:$0xff]  ;;  %v3104_v39 = vld [vmem:[%s3088_s4 + $0x28] sm:$0xff]  ;;  %s2445_s30 = sshll.u32 %s4599_s28, 4  ;;  %s4721_s30 = int_to_ptr.vmem [resolvable:$true] %s2445_s30 }
  0x27   : > { %v3109_v41 = vld [vmem:[%s3088_s4 + $0x38] sm:$0xff]  ;;  %v3114_v43 = vld [vmem:[%s3088_s4 + $0x48] sm:$0xff]  ;;  %s2801_s7 = scalar_lea.vmem %s4721_s30, 8192  ;;  %p2808_p0 = scmp.lt.s32.totalorder %s4721_s30, %s2806_s9 }
  0x28   : > { %253 = vperm.xlu1 %2726, %v2982_v8   ;;  %250 = vperm.xlu0 %2725, %v2985_v9   ;;  %v3119_v45 = vld [vmem:[%s3088_s4 + $0x58] sm:$0xff]  ;;  %v3124_v47 = vld [vmem:[%s3088_s4 + $0x68] sm:$0xff]  ;;  %p2802_p11 = scmp.ne.s32.totalorder %s4721_s30, %s2801_s7  ;;  %p2809_p1 = scmp.lt.s32.totalorder %s2807_s10, %s2801_s7 }
  0x29   : > { %v3129_v49 = vld [vmem:[%s3088_s4 + $0x78] sm:$0xff]  ;;  %v3134_v51 = vld [vmem:[%s3088_s4 + $0x88] sm:$0xff] }
  0x2a   : > { %v3139_v53 = vld [vmem:[%s3088_s4 + $0x98] sm:$0xff]  ;;  %v3144_v55 = vld [vmem:[%s3088_s4 + $0xa8] sm:$0xff]  ;;  %p2803_p12 = pnand %p2802_p11, %p2932_p5  ;;  %p2810_p2 = por %p2809_p1, %p2808_p0 }
  0x2b   : > { %v3149_v57 = vld [vmem:[%s3088_s4 + $0xb8] sm:$0xff]  ;;  %v3154_v59 = vld [vmem:[%s3088_s4 + $0xc8] sm:$0xff] }
  0x2c   : > { %259 = vperm.xlu1 %2726, %v2990_v10   ;;  %256 = vperm.xlu0 %2725, %v2993_v11   ;;  %v3159_v61 = vld [vmem:[%s3088_s4 + $0xd8] sm:$0xff]  ;;  %v3164_v63 = vld [vmem:[%s3088_s4 + $0xe8] sm:$0xff]  ;;  %p2804_p13 = pneg %p2803_p12 }
  0x2e   : > { %p2811_p3 = pnand %p2810_p2, %p2804_p13 }
  0x30   : > { %265 = vperm.xlu1 %2726, %v2998_v12   ;;  %262 = vperm.xlu0 %2725, %v3001_v13  }
  0x34   : > { %271 = vperm.xlu1 %2726, %v3006_v14   ;;  %268 = vperm.xlu0 %2725, %v3009_v15  }
  0x38   : > { %277 = vperm.xlu1 %2726, %v3014_v16   ;;  %274 = vperm.xlu0 %2725, %v3017_v17  }
  0x3c   : > { %283 = vperm.xlu1 %2726, %v3022_v18   ;;  %280 = vperm.xlu0 %2725, %v3025_v19  }
  0x40   : > { %289 = vperm.xlu1 %2726, %v3030_v20   ;;  %286 = vperm.xlu0 %2725, %v3033_v21  }
  0x44   : > { %295 = vperm.xlu1 %2726, %v3038_v22   ;;  %292 = vperm.xlu0 %2725, %v3041_v23  }
  0x48   : > { %301 = vperm.xlu1 %2726, %v3046_v24   ;;  %298 = vperm.xlu0 %2725, %v3049_v25  }
  0x4c   : > { %307 = vperm.xlu1 %2726, %v3054_v26   ;;  %304 = vperm.xlu0 %2725, %v3057_v27  }
  0x50   : > { %313 = vperm.xlu1 %2726, %v3062_v28   ;;  %310 = vperm.xlu0 %2725, %v3065_v29  }
  0x54   : > { %319 = vperm.xlu1 %2726, %v3070_v30   ;;  %316 = vperm.xlu0 %2725, %v3073_v31  }
  0x58   : > { %325 = vperm.xlu1 %2726, %v3078_v32   ;;  %322 = vperm.xlu0 %2725, %v3081_v33  }
  0x5c   : > { %2727 = vset.pattern.permute.xlu1 %v4776_v36  ;;  %1004 = vperm.xlu0 %2725, %v3093_v34  }
  0x5d   : > { %491 = vperm.xlu1 %2727, %v456_v35   ;;  %v483_v35 = vadd.s32 5, %v3073_v31 }
  0x60   : > { %1019 = vperm.xlu0 %2725, %v3099_v37  }
  0x61   : > { %494 = vperm.xlu1 %2727, %v457_v38   ;;  %v3169_v38 = vld [vmem:[%s3088_s4 + $0xf8] sm:$0xff] }
  0x64   : > { %1029 = vperm.xlu0 %2725, %v3104_v39  }
  0x65   : > { %500 = vperm.xlu1 %2727, %v459_v40   ;;  %v485_v40 = vadd.s32 5, %v3081_v33 }
  0x68   : > { %1039 = vperm.xlu0 %2725, %v3109_v41  }
  0x69   : > { %506 = vperm.xlu1 %2727, %v461_v42   ;;  %v455_v42 = vadd.s32 5, %v2961_v3 }
  0x6c   : > { %1049 = vperm.xlu0 %2725, %v3114_v43  }
  0x6d   : > { %512 = vperm.xlu1 %2727, %v463_v44   ;;  %v711_v44 = vadd.s32 12, %v2961_v3  ;;  %v460_v3 = vadd.s32 5, %v2974_v6 }
  0x70   : > { %1059 = vperm.xlu0 %2725, %v3119_v45  }
  0x71   : > { %518 = vperm.xlu1 %2727, %v465_v46  }
  0x74   : > { %1069 = vperm.xlu0 %2725, %v3124_v47  }
  0x75   : > { %524 = vperm.xlu1 %2727, %v467_v48  }
  0x78   : > { %1079 = vperm.xlu0 %2725, %v3129_v49  }
  0x79   : > { %530 = vperm.xlu1 %2727, %v469_v50   ;;  %v4774_v50 = vmov 2  }
  0x7c   : > { %1089 = vperm.xlu0 %2725, %v3134_v51  }
  0x7d   : > { %536 = vperm.xlu1 %2727, %v471_v52   ;;  %v458_v52 = vadd.s32 5, %v2966_v4 }
  0x80   : > { %1099 = vperm.xlu0 %2725, %v3139_v53  }
  0x81   : > { %542 = vperm.xlu1 %2727, %v473_v54   ;;  %v713_v54 = vadd.s32 12, %v2958_v2  ;;  %v716_v2 = vadd.s32 12, %v2974_v6  ;;  %v720_v6 = vadd.s32 12, %v2990_v10 }
  0x84   : > { %1109 = vperm.xlu0 %2725, %v3144_v55  }
  0x85   : > { %548 = vperm.xlu1 %2727, %v475_v56  }
  0x88   : > { %1119 = vperm.xlu0 %2725, %v3149_v57  }
  0x89   : > { %554 = vperm.xlu1 %2727, %v477_v58  }
  0x8c   : > { %1129 = vperm.xlu0 %2725, %v3154_v59  }
  0x8d   : > { %560 = vperm.xlu1 %2727, %v479_v60   ;;  %v714_v60 = vadd.s32 12, %v2966_v4  ;;  %v718_v4 = vadd.s32 12, %v2982_v8 }
  0x90   : > { %1139 = vperm.xlu0 %2725, %v3159_v61  }
  0x91   : > { %566 = vperm.xlu1 %2727, %v481_v62  }
  0x94   : > { %1149 = vperm.xlu0 %2725, %v3164_v63  }
  0x95   : > { %572 = vperm.xlu1 %2727, %v483_v35  }
  0x98   : > { %1159 = vperm.xlu0 %2725, %v3169_v38  }
  0x99   : > { %578 = vperm.xlu1 %2727, %v485_v40   ;;  %v462_v40 = vadd.s32 5, %v2982_v8  ;;  %v722_v8 = vadd.s32 12, %v2998_v12 }
  0x9b   : > { %v3175_v46 = vpop.permute.xlu1 %238  ;;  %v3177_v48 = vpop.permute.xlu0 %232 }
  0x9c   : > { %4809 = vst [vmem:[#allocation5_spill] sm:$0xff] %v3175_v46  ;;  %4810 = vst [vmem:[#allocation6_spill] sm:$0xff] %v3177_v48  ;;  %2730 = vset.pattern.permute.xlu0 %v4776_v36 }
  0x9d   : > { %2728 = vset.pattern.permute.xlu1 %v4774_v50  ;;  %488 = vperm.xlu0 %2730, %v455_v42  }
  0x9e   : > { %744 = vperm.xlu1 %2728, %v711_v44  }
  0x9f   : > { %v3183_v56 = vpop.permute.xlu1 %241  ;;  %v3185_v58 = vpop.permute.xlu0 %235 }
  0xa0   : > { %4811 = vst [vmem:[#allocation7_spill] sm:$0xff] %v3183_v56  ;;  %4812 = vst [vmem:[#allocation8_spill] sm:$0xff] %v3185_v58  ;;  %v3383_v58 = vld [vmem:[%s3088_s4 + $0xd0] sm:$0xff]  ;;  %v3392_v56 = vld [vmem:[%s3088_s4 + $0xe0] sm:$0xff] }
  0xa1   : > { %497 = vperm.xlu0 %2730, %v458_v52   ;;  %v464_v52 = vadd.s32 5, %v2990_v10  ;;  %v724_v10 = vadd.s32 12, %v3006_v14 }
  0xa2   : > { %750 = vperm.xlu1 %2728, %v713_v54  }
  0xa3   : > { %v3189_v62 = vpop.permute.xlu1 %247  ;;  %v3191_v35 = vpop.permute.xlu0 %244 }
  0xa4   : > { %4813 = vst [vmem:[#allocation9_spill] sm:$0xff] %v3189_v62 }
  0xa5   : > { %503 = vperm.xlu0 %2730, %v460_v3   ;;  %v466_v3 = vadd.s32 5, %v2998_v12  ;;  %v726_v12 = vadd.s32 12, %v3014_v16 }
  0xa6   : > { %753 = vperm.xlu1 %2728, %v714_v60  }
  0xa7   : > { %v3195_v42 = vpop.permute.xlu1 %253  ;;  %v3197_v44 = vpop.permute.xlu0 %250 }
  0xa8   : > { %4814 = vst [vmem:[#allocation10_spill] sm:$0xff] %v3195_v42  ;;  %v3374_v42 = vld [vmem:[%s3088_s4 + $0xc0] sm:$0xff] }
  0xa9   : > { %509 = vperm.xlu0 %2730, %v462_v40   ;;  %v468_v40 = vadd.s32 5, %v3006_v14  ;;  %v728_v14 = vadd.s32 12, %v3022_v18  ;;  %4854 = vst [vmem:[#allocation49_spill] sm:$0xff] %v3374_v42 }
  0xaa   : > { %759 = vperm.xlu1 %2728, %v716_v2  }
  0xab   : > { %v3201_v54 = vpop.permute.xlu1 %259  ;;  %v3203_v1 = vpop.permute.xlu0 %256 }
  0xac   : > { %4815 = vst [vmem:[#allocation11_spill] sm:$0xff] %v3201_v54 }
  0xad   : > { %515 = vperm.xlu0 %2730, %v464_v52   ;;  %v470_v52 = vadd.s32 5, %v3014_v16  ;;  %v730_v16 = vadd.s32 12, %v3030_v20 }
  0xae   : > { %765 = vperm.xlu1 %2728, %v718_v4  }
  0xaf   : > { %v3207_v60 = vpop.permute.xlu1 %265  ;;  %v3209_v50 = vpop.permute.xlu0 %262 }
  0xb0   : > { %4816 = vst [vmem:[#allocation12_spill] sm:$0xff] %v3207_v60 }
  0xb1   : > { %521 = vperm.xlu0 %2730, %v466_v3   ;;  %v472_v3 = vadd.s32 5, %v3022_v18  ;;  %v732_v18 = vadd.s32 12, %v3038_v22 }
  0xb2   : > { %771 = vperm.xlu1 %2728, %v720_v6  }
  0xb3   : > { %v3213_v2 = vpop.permute.xlu1 %271  ;;  %v3215_v36 = vpop.permute.xlu0 %268 }
  0xb4   : > { %4817 = vst [vmem:[#allocation13_spill] sm:$0xff] %v3213_v2 }
  0xb5   : > { %527 = vperm.xlu0 %2730, %v468_v40   ;;  %v474_v40 = vadd.s32 5, %v3030_v20  ;;  %v734_v20 = vadd.s32 12, %v3046_v24 }
  0xb6   : > { %777 = vperm.xlu1 %2728, %v722_v8  }
  0xb7   : > { %v3219_v4 = vpop.permute.xlu1 %277  ;;  %v3221_v0 = vpop.permute.xlu0 %274 }
  0xb8   : > { %4818 = vst [vmem:[#allocation14_spill] sm:$0xff] %v3219_v4 }
  0xb9   : > { %533 = vperm.xlu0 %2730, %v470_v52   ;;  %v476_v52 = vadd.s32 5, %v3038_v22  ;;  %v736_v22 = vadd.s32 12, %v3054_v26 }
  0xba   : > { %783 = vperm.xlu1 %2728, %v724_v10  }
  0xbb   : > { %v3225_v6 = vpop.permute.xlu1 %283  ;;  %v3227_v2 = vpop.permute.xlu0 %280 }
  0xbc   : > { %4819 = vst [vmem:[#allocation15_spill] sm:$0xff] %v3225_v6  ;;  %4820 = vst [vmem:[#allocation16_spill] sm:$0xff] %v3227_v2  ;;  %v3356_v6 = vld [vmem:[%s3088_s4 + $0xa0] sm:$0xff] }
  0xbd   : > { %539 = vperm.xlu0 %2730, %v472_v3   ;;  %v478_v3 = vadd.s32 5, %v3046_v24  ;;  %v738_v24 = vadd.s32 12, %v3062_v28 }
  0xbe   : > { %789 = vperm.xlu1 %2728, %v726_v12  }
  0xbf   : > { %v3231_v8 = vpop.permute.xlu1 %289  ;;  %v3233_v4 = vpop.permute.xlu0 %286 }
  0xc0   : > { %4821 = vst [vmem:[#allocation17_spill] sm:$0xff] %v3231_v8  ;;  %4822 = vst [vmem:[#allocation18_spill] sm:$0xff] %v3233_v4  ;;  %v3302_v4 = vld [vmem:[%s3088_s4 + $0x40] sm:$0xff] }
  0xc1   : > { %545 = vperm.xlu0 %2730, %v474_v40   ;;  %v480_v40 = vadd.s32 5, %v3054_v26  ;;  %v740_v26 = vadd.s32 12, %v3070_v30 }
  0xc2   : > { %795 = vperm.xlu1 %2728, %v728_v14  }
  0xc3   : > { %v3237_v10 = vpop.permute.xlu1 %295  ;;  %v3239_v60 = vpop.permute.xlu0 %292 }
  0xc4   : > { %4823 = vst [vmem:[#allocation19_spill] sm:$0xff] %v3237_v10  ;;  %4824 = vst [vmem:[#allocation20_spill] sm:$0xff] %v3239_v60 }
  0xc5   : > { %551 = vperm.xlu0 %2730, %v476_v52   ;;  %v482_v52 = vadd.s32 5, %v3062_v28  ;;  %v3272_v28 = vld [vmem:[%s3088_s4 + $0x8] sm:$0xff] }
  0xc6   : > { %801 = vperm.xlu1 %2728, %v730_v16  }
  0xc7   : > { %v3243_v12 = vpop.permute.xlu1 %301  ;;  %v3245_v62 = vpop.permute.xlu0 %298 }
  0xc8   : > { %4825 = vst [vmem:[#allocation21_spill] sm:$0xff] %v3243_v12  ;;  %4826 = vst [vmem:[#allocation22_spill] sm:$0xff] %v3245_v62 }
  0xc9   : > { %557 = vperm.xlu0 %2730, %v478_v3   ;;  %v484_v3 = vadd.s32 5, %v3070_v30  ;;  %v3281_v30 = vld [vmem:[%s3088_s4 + $0x20] sm:$0xff] }
  0xca   : > { %807 = vperm.xlu1 %2728, %v732_v18  }
  0xcb   : > { %v3249_v14 = vpop.permute.xlu1 %307  ;;  %v3251_v10 = vpop.permute.xlu0 %304 }
  0xcc   : > { %4827 = vst [vmem:[#allocation23_spill] sm:$0xff] %v3249_v14  ;;  %4828 = vst [vmem:[#allocation24_spill] sm:$0xff] %v3251_v10  ;;  %v3311_v14 = vld [vmem:[%s3088_s4 + $0x50] sm:$0xff] }
  0xcd   : > { %563 = vperm.xlu0 %2730, %v480_v40   ;;  %v3365_v10 = vld [vmem:[%s3088_s4 + $0xb0] sm:$0xff] }
  0xce   : > { %813 = vperm.xlu1 %2728, %v734_v20   ;;  %v486_v20 = vadd.s32 5, %v3078_v32 }
  0xcf   : > { %v3255_v16 = vpop.permute.xlu1 %313  ;;  %v3257_v12 = vpop.permute.xlu0 %310 }
  0xd0   : > { %4829 = vst [vmem:[#allocation25_spill] sm:$0xff] %v3255_v16  ;;  %4830 = vst [vmem:[#allocation26_spill] sm:$0xff] %v3257_v12  ;;  %v3347_v12 = vld [vmem:[%s3088_s4 + $0x90] sm:$0xff] }
  0xd1   : > { %569 = vperm.xlu0 %2730, %v482_v52  }
  0xd2   : > { %819 = vperm.xlu1 %2728, %v736_v22   ;;  %v742_v22 = vadd.s32 12, %v3078_v32  ;;  %v3290_v32 = vld [vmem:[%s3088_s4 + $0x30] sm:$0xff] }
  0xd3   : > { %v3261_v18 = vpop.permute.xlu1 %319  ;;  %v3263_v40 = vpop.permute.xlu0 %316 }
  0xd4   : > { %4831 = vst [vmem:[#allocation27_spill] sm:$0xff] %v3261_v18  ;;  %4832 = vst [vmem:[#allocation28_spill] sm:$0xff] %v3263_v40 }
  0xd5   : > { %575 = vperm.xlu0 %2730, %v484_v3  }
  0xd6   : > { %825 = vperm.xlu1 %2728, %v738_v24  }
  0xd7   : > { %v3267_v16 = vpop.permute.xlu1 %325  ;;  %v3269_v52 = vpop.permute.xlu0 %322 }
  0xd8   : > { %4833 = vst [vmem:[#allocation29_spill] sm:$0xff] %v3267_v16  ;;  %4834 = vst [vmem:[#allocation30_spill] sm:$0xff] %v3269_v52  ;;  %v3338_v52 = vld [vmem:[%s3088_s4 + $0x80] sm:$0xff] }
  0xd9   : > { %581 = vperm.xlu0 %2730, %v486_v20  }
  0xda   : > { %831 = vperm.xlu1 %2728, %v740_v26   ;;  %v4839_v26 = vmov 0  }
  0xdb   : > { %v3275_v18 = vpop.permute.xlu0 %1004 }
  0xdc   : > { %4835 = vst [vmem:[#allocation31_spill] sm:$0xff] %v3275_v18  ;;  %v3277_v3 = vpop.permute.xlu1 %491 }
  0xdd   : > { %4836 = vst [vmem:[#allocation32_spill] sm:$0xff] %v3277_v3  ;;  %1234 = vperm.xlu0 %2730, %v3272_v28   ;;  %v3320_v3 = vld [vmem:[%s3088_s4 + $0x60] sm:$0xff] }
  0xde   : > { %837 = vperm.xlu1 %2728, %v742_v22   ;;  %v3298_v22 = vld [vmem:[%s3088_s4 + $0x10] sm:$0xff] }
  0xdf   : > { %v3283_v24 = vpop.permute.xlu0 %1019 }
  0xe0   : > { %4837 = vst [vmem:[#allocation33_spill] sm:$0xff] %v3283_v24  ;;  %v3285_v20 = vpop.permute.xlu1 %494  ;;  %v3329_v24 = vld [vmem:[%s3088_s4 + $0x70] sm:$0xff] }
  0xe1   : > { %4838 = vst [vmem:[#allocation34_spill] sm:$0xff] %v3285_v20  ;;  %1246 = vperm.xlu0 %2730, %v3281_v30   ;;  %4844 = vst [vmem:[#allocation39_spill] sm:$0xff] %v3329_v24 }
  0xe2   : > { %2729 = vset.pattern.permute.xlu1 %v4839_v26 }
  0xe3   : > { %1009 = vperm.xlu1 %2729, %v3272_v28   ;;  %v3293_v16 = vpop.permute.xlu0 %1029 }
  0xe4   : > { %4840 = vst [vmem:[#allocation35_spill] sm:$0xff] %v3293_v16  ;;  %v3295_v60 = vpop.permute.xlu1 %500 }
  0xe5   : > { %1254 = vperm.xlu0 %2730, %v3290_v32  }
  0xe7   : > { %1014 = vperm.xlu1 %2729, %v3298_v22   ;;  %v3305_v20 = vpop.permute.xlu0 %1039 }
  0xe8   : > { %4841 = vst [vmem:[#allocation36_spill] sm:$0xff] %v3305_v20  ;;  %v3307_v26 = vpop.permute.xlu1 %506 }
  0xe9   : > { %1262 = vperm.xlu0 %2730, %v3302_v4  }
  0xeb   : > { %1024 = vperm.xlu1 %2729, %v3281_v30   ;;  %v3314_v16 = vpop.permute.xlu0 %1049 }
  0xec   : > { %4842 = vst [vmem:[#allocation37_spill] sm:$0xff] %v3314_v16  ;;  %v3316_v8 = vpop.permute.xlu1 %512 }
  0xed   : > { %1270 = vperm.xlu0 %2730, %v3311_v14  }
  0xef   : > { %1034 = vperm.xlu1 %2729, %v3290_v32   ;;  %v3323_v46 = vpop.permute.xlu0 %1059 }
  0xf0   : > { %4843 = vst [vmem:[#allocation38_spill] sm:$0xff] %v3323_v46  ;;  %v3325_v20 = vpop.permute.xlu1 %518 }
  0xf1   : > { %1278 = vperm.xlu0 %2730, %v3320_v3  }
  0xf3   : > { %1044 = vperm.xlu1 %2729, %v3302_v4   ;;  %v3332_v16 = vpop.permute.xlu0 %1069 }
  0xf4   : > { %4845 = vst [vmem:[#allocation40_spill] sm:$0xff] %v3332_v16  ;;  %v3334_v18 = vpop.permute.xlu1 %524 }
  0xf5   : > { %1286 = vperm.xlu0 %2730, %v3329_v24  }
  0xf7   : > { %1054 = vperm.xlu1 %2729, %v3311_v14   ;;  %v3341_v46 = vpop.permute.xlu0 %1079 }
  0xf8   : > { %4846 = vst [vmem:[#allocation41_spill] sm:$0xff] %v3341_v46  ;;  %v3343_v40 = vpop.permute.xlu1 %530 }
  0xf9   : > { %4847 = vst [vmem:[#allocation42_spill] sm:$0xff] %v3343_v40  ;;  %1294 = vperm.xlu0 %2730, %v3338_v52  }
  0xfb   : > { %1064 = vperm.xlu1 %2729, %v3320_v3   ;;  %v3350_v16 = vpop.permute.xlu0 %1089 }
  0xfc   : > { %4848 = vst [vmem:[#allocation43_spill] sm:$0xff] %v3350_v16  ;;  %v3352_v2 = vpop.permute.xlu1 %536 }
  0xfd   : > { %4849 = vst [vmem:[#allocation44_spill] sm:$0xff] %v3352_v2  ;;  %1302 = vperm.xlu0 %2730, %v3347_v12  }
  0xff   : > { %1074 = vperm.xlu1 %2729, %v3329_v24   ;;  %v3359_v46 = vpop.permute.xlu0 %1099  ;;  %v717_v24 = vadd.s32 12, %v2985_v9 }
 0x100   : > { %4850 = vst [vmem:[#allocation45_spill] sm:$0xff] %v3359_v46  ;;  %v3361_v54 = vpop.permute.xlu1 %542 }
 0x101   : > { %4851 = vst [vmem:[#allocation46_spill] sm:$0xff] %v3361_v54  ;;  %1310 = vperm.xlu0 %2730, %v3356_v6  }
 0x103   : > { %1084 = vperm.xlu1 %2729, %v3338_v52   ;;  %v3368_v16 = vpop.permute.xlu0 %1109 }
 0x104   : > { %4852 = vst [vmem:[#allocation47_spill] sm:$0xff] %v3368_v16  ;;  %v3370_v2 = vpop.permute.xlu1 %548 }
 0x105   : > { %4853 = vst [vmem:[#allocation48_spill] sm:$0xff] %v3370_v2  ;;  %1318 = vperm.xlu0 %2730, %v3365_v10  }
 0x107   : > { %1094 = vperm.xlu1 %2729, %v3347_v12   ;;  %v3377_v46 = vpop.permute.xlu0 %1119 }
 0x108   : > { %4855 = vst [vmem:[#allocation50_spill] sm:$0xff] %v3377_v46  ;;  %v3379_v54 = vpop.permute.xlu1 %554 }
 0x109   : > { %4856 = vst [vmem:[#allocation51_spill] sm:$0xff] %v3379_v54  ;;  %1326 = vperm.xlu0 %2730, %v3374_v42   ;;  %v3401_v54 = vld [vmem:[%s3088_s4 + $0xf0] sm:$0xff] }
 0x10b   : > { %1104 = vperm.xlu1 %2729, %v3356_v6   ;;  %v3386_v16 = vpop.permute.xlu0 %1129 }
 0x10c   : > { %4857 = vst [vmem:[#allocation52_spill] sm:$0xff] %v3386_v16  ;;  %v3388_v2 = vpop.permute.xlu1 %560 }
 0x10d   : > { %4858 = vst [vmem:[#allocation53_spill] sm:$0xff] %v3388_v2  ;;  %1334 = vperm.xlu0 %2730, %v3383_v58  }
 0x10f   : > { %1114 = vperm.xlu1 %2729, %v3365_v10   ;;  %v3395_v62 = vpop.permute.xlu0 %1139 }
 0x110   : > { %4859 = vst [vmem:[#allocation54_spill] sm:$0xff] %v3395_v62  ;;  %v3397_v46 = vpop.permute.xlu1 %566  ;;  %v4792_v62 = vmov 3  }
 0x111   : > { %4860 = vst [vmem:[#allocation55_spill] sm:$0xff] %v3397_v46  ;;  %1342 = vperm.xlu0 %2730, %v3392_v56  }
 0x113   : > { %1124 = vperm.xlu1 %2729, %v3374_v42   ;;  %v3404_v48 = vpop.permute.xlu0 %1149 }
 0x114   : > { %4861 = vst [vmem:[#allocation56_spill] sm:$0xff] %v3404_v48  ;;  %v3406_v16 = vpop.permute.xlu1 %572 }
 0x115   : > { %4862 = vst [vmem:[#allocation57_spill] sm:$0xff] %v3406_v16  ;;  %1350 = vperm.xlu0 %2730, %v3401_v54  }
 0x117   : > { %1134 = vperm.xlu1 %2729, %v3383_v58   ;;  %v3410_v2 = vpop.permute.xlu0 %1159 }
 0x118   : > { %4863 = vst [vmem:[#allocation58_spill] sm:$0xff] %v3410_v2  ;;  %v3412_v40 = vpop.permute.xlu1 %578 }
 0x119   : > { %4864 = vst [vmem:[#allocation59_spill] sm:$0xff] %v3412_v40  ;;  %2733 = vset.pattern.permute.xlu0 %v4792_v62  ;;  %v4869_v40 = vmov 1  }
 0x11a   : > { %1620 = vperm.xlu0 %2733, %v3093_v34  }
 0x11b   : > { %1144 = vperm.xlu1 %2729, %v3392_v56  }
 0x11c   : > { %v3417_v42 = vpop.permute.xlu0 %488 }
 0x11d   : > { %4865 = vst [vmem:[#allocation60_spill] sm:$0xff] %v3417_v42  ;;  %v3419_v48 = vpop.permute.xlu1 %744 }
 0x11e   : > { %4866 = vst [vmem:[#allocation61_spill] sm:$0xff] %v3419_v48  ;;  %1688 = vperm.xlu0 %2733, %v3134_v51  }
 0x11f   : > { %1154 = vperm.xlu1 %2729, %v3401_v54  }
 0x120   : > { %v3423_v16 = vpop.permute.xlu0 %497 }
 0x121   : > { %4867 = vst [vmem:[#allocation62_spill] sm:$0xff] %v3423_v16  ;;  %v3425_v2 = vpop.permute.xlu1 %750  ;;  %v4796_v16 = vmov 4  }
 0x122   : > { %4868 = vst [vmem:[#allocation63_spill] sm:$0xff] %v3425_v2  ;;  %1632 = vperm.xlu0 %2733, %v3099_v37  }
 0x123   : > { %2731 = vset.pattern.permute.xlu1 %v4869_v40 }
 0x124   : > { %1230 = vperm.xlu1 %2731, %v3093_v34   ;;  %v3430_v62 = vpop.permute.xlu0 %503 }
 0x125   : > { %4870 = vst [vmem:[#allocation64_spill] sm:$0xff] %v3430_v62  ;;  %v3432_v46 = vpop.permute.xlu1 %753 }
 0x126   : > { %4871 = vst [vmem:[#allocation65_spill] sm:$0xff] %v3432_v46  ;;  %1700 = vperm.xlu0 %2733, %v3356_v6  }
 0x128   : > { %1238 = vperm.xlu1 %2731, %v3298_v22   ;;  %v3436_v48 = vpop.permute.xlu0 %509 }
 0x129   : > { %4872 = vst [vmem:[#allocation66_spill] sm:$0xff] %v3436_v48  ;;  %v3438_v42 = vpop.permute.xlu1 %759 }
 0x12a   : > { %4873 = vst [vmem:[#allocation67_spill] sm:$0xff] %v3438_v42  ;;  %2746 = vset.pattern.permute.xlu0 %v4796_v16 }
 0x12b   : > { %1815 = vperm.xlu0 %2746, %v3093_v34  }
 0x12c   : > { %1242 = vperm.xlu1 %2731, %v3099_v37   ;;  %v3443_v40 = vpop.permute.xlu0 %515 }
 0x12d   : > { %4874 = vst [vmem:[#allocation68_spill] sm:$0xff] %v3443_v40  ;;  %v3445_v62 = vpop.permute.xlu1 %765 }
 0x12e   : > { %4875 = vst [vmem:[#allocation69_spill] sm:$0xff] %v3445_v62 }
 0x12f   : > { %1883 = vperm.xlu0 %2746, %v3134_v51  }
 0x130   : > { %1250 = vperm.xlu1 %2731, %v3104_v39   ;;  %v3449_v2 = vpop.permute.xlu0 %521 }
 0x131   : > { %4876 = vst [vmem:[#allocation70_spill] sm:$0xff] %v3449_v2  ;;  %v3451_v48 = vpop.permute.xlu1 %771 }
 0x132   : > { %4877 = vst [vmem:[#allocation71_spill] sm:$0xff] %v3451_v48 }
 0x133   : > { %1827 = vperm.xlu0 %2746, %v3099_v37  }
 0x134   : > { %1258 = vperm.xlu1 %2731, %v3109_v41   ;;  %v3455_v16 = vpop.permute.xlu0 %527 }
 0x135   : > { %4878 = vst [vmem:[#allocation72_spill] sm:$0xff] %v3455_v16  ;;  %v3457_v42 = vpop.permute.xlu1 %777  ;;  %v712_v16 = vadd.s32 12, %v2969_v5 }
 0x136   : > { %4879 = vst [vmem:[#allocation73_spill] sm:$0xff] %v3457_v42 }
 0x137   : > { %1895 = vperm.xlu0 %2746, %v3356_v6  }
 0x138   : > { %1266 = vperm.xlu1 %2731, %v3114_v43   ;;  %v3461_v40 = vpop.permute.xlu0 %533 }
 0x139   : > { %4880 = vst [vmem:[#allocation74_spill] sm:$0xff] %v3461_v40  ;;  %v3463_v62 = vpop.permute.xlu1 %783  ;;  %v4886_v40 = vmov 2  }
 0x13a   : > { %4881 = vst [vmem:[#allocation75_spill] sm:$0xff] %v3463_v62  ;;  %v715_v62 = vadd.s32 12, %v2977_v7 }
 0x13b   : > { %1839 = vperm.xlu0 %2746, %v3290_v32  }
 0x13c   : > { %1274 = vperm.xlu1 %2731, %v3119_v45   ;;  %v3467_v2 = vpop.permute.xlu0 %539 }
 0x13d   : > { %4882 = vst [vmem:[#allocation76_spill] sm:$0xff] %v3467_v2  ;;  %v3469_v48 = vpop.permute.xlu1 %789 }
 0x13e   : > { %4883 = vst [vmem:[#allocation77_spill] sm:$0xff] %v3469_v48 }
 0x13f   : > { %1907 = vperm.xlu0 %2746, %v3149_v57  }
 0x140   : > { %1282 = vperm.xlu1 %2731, %v3124_v47   ;;  %v3474_v42 = vpop.permute.xlu0 %545 }
 0x141   : > { %4884 = vst [vmem:[#allocation78_spill] sm:$0xff] %v3474_v42  ;;  %v3476_v46 = vpop.permute.xlu1 %795 }
 0x142   : > { %4885 = vst [vmem:[#allocation79_spill] sm:$0xff] %v3476_v46  ;;  %v719_v46 = vadd.s32 12, %v2993_v11 }
 0x143   : > { %2757 = vset.pattern.permute.xlu0 %v4886_v40 }
 0x144   : > { %1290 = vperm.xlu1 %2731, %v3129_v49   ;;  %747 = vperm.xlu0 %2757, %v712_v16   ;;  %v3481_v2 = vpop.permute.xlu0 %551 }
 0x145   : > { %4887 = vst [vmem:[#allocation80_spill] sm:$0xff] %v3481_v2  ;;  %v3483_v48 = vpop.permute.xlu1 %801  ;;  %v721_v2 = vadd.s32 12, %v3001_v13 }
 0x146   : > { %4888 = vst [vmem:[#allocation81_spill] sm:$0xff] %v3483_v48  ;;  %v729_v48 = vadd.s32 12, %v3033_v21 }
 0x148   : > { %1298 = vperm.xlu1 %2731, %v3134_v51   ;;  %756 = vperm.xlu0 %2757, %v715_v62   ;;  %v3487_v5 = vpop.permute.xlu0 %557 }
 0x149   : > { %4889 = vst [vmem:[#allocation82_spill] sm:$0xff] %v3487_v5  ;;  %v3489_v42 = vpop.permute.xlu1 %807  ;;  %v723_v5 = vadd.s32 12, %v3009_v15 }
 0x14a   : > { %4890 = vst [vmem:[#allocation83_spill] sm:$0xff] %v3489_v42  ;;  %v727_v42 = vadd.s32 12, %v3025_v19 }
 0x14c   : > { %1306 = vperm.xlu1 %2731, %v3139_v53   ;;  %762 = vperm.xlu0 %2757, %v717_v24   ;;  %v3493_v7 = vpop.permute.xlu0 %563 }
 0x14d   : > { %v3495_v16 = vpop.permute.xlu1 %813 }
 0x14e   : > { %4891 = vst [vmem:[#allocation84_spill] sm:$0xff] %v3495_v16  ;;  %v725_v16 = vadd.s32 12, %v3017_v17 }
 0x150   : > { %1314 = vperm.xlu1 %2731, %v3144_v55   ;;  %768 = vperm.xlu0 %2757, %v719_v46   ;;  %v3499_v9 = vpop.permute.xlu0 %569 }
 0x151   : > { %v3501_v62 = vpop.permute.xlu1 %819 }
 0x154   : > { %1322 = vperm.xlu1 %2731, %v3149_v57   ;;  %774 = vperm.xlu0 %2757, %v721_v2   ;;  %v3505_v11 = vpop.permute.xlu0 %575 }
 0x155   : > { %4892 = vst [vmem:[#allocation85_spill] sm:$0xff] %v3505_v11  ;;  %v3507_v24 = vpop.permute.xlu1 %825  ;;  %v4991_v11 = vld [vmem:[#allocation71_spill] sm:$0xff] }
 0x158   : > { %1330 = vperm.xlu1 %2731, %v3154_v59   ;;  %780 = vperm.xlu0 %2757, %v723_v5   ;;  %v3511_v13 = vpop.permute.xlu0 %581 }
 0x159   : > { %4893 = vst [vmem:[#allocation86_spill] sm:$0xff] %v3511_v13  ;;  %v3513_v46 = vpop.permute.xlu1 %831  ;;  %v731_v13 = vadd.s32 12, %v3041_v23  ;;  %v735_v23 = vadd.s32 12, %v3057_v27 }
 0x15a   : > { %4894 = vst [vmem:[#allocation87_spill] sm:$0xff] %v3513_v46 }
 0x15c   : > { %1338 = vperm.xlu1 %2731, %v3159_v61   ;;  %786 = vperm.xlu0 %2757, %v725_v16   ;;  %v3517_v15 = vpop.permute.xlu0 %1234 }
 0x15d   : > { %v3519_v2 = vpop.permute.xlu1 %837 }
 0x15e   : > { %4895 = vst [vmem:[#allocation88_spill] sm:$0xff] %v3519_v2  ;;  %v733_v2 = vadd.s32 12, %v3049_v25  ;;  %v737_v25 = vadd.s32 12, %v3065_v29 }
 0x160   : > { %1346 = vperm.xlu1 %2731, %v3164_v63   ;;  %792 = vperm.xlu0 %2757, %v727_v42   ;;  %v3523_v17 = vpop.permute.xlu0 %1246 }
 0x161   : > { %4896 = vst [vmem:[#allocation89_spill] sm:$0xff] %v3523_v17 }
 0x162   : > { %v3525_v5 = vpop.permute.xlu1 %1009 }
 0x164   : > { %1354 = vperm.xlu1 %2731, %v3169_v38   ;;  %798 = vperm.xlu0 %2757, %v729_v48   ;;  %v3529_v19 = vpop.permute.xlu0 %1254 }
 0x165   : > { %4897 = vst [vmem:[#allocation90_spill] sm:$0xff] %v3529_v19 }
 0x166   : > { %v3531_v16 = vpop.permute.xlu1 %1014 }
 0x167   : > { %4898 = vst [vmem:[#allocation91_spill] sm:$0xff] %v3531_v16  ;;  %v4981_v16 = vld [vmem:[#allocation69_spill] sm:$0xff] }
 0x168   : > { %2732 = vset.pattern.permute.xlu1 %v4886_v40  ;;  %804 = vperm.xlu0 %2757, %v731_v13   ;;  %v3535_v21 = vpop.permute.xlu0 %1262 }
 0x169   : > { %4899 = vst [vmem:[#allocation92_spill] sm:$0xff] %v3535_v21  ;;  %1429 = vperm.xlu1 %2732, %v3272_v28   ;;  %v739_v21 = vadd.s32 12, %v3073_v31 }
 0x16a   : > { %v3538_v42 = vpop.permute.xlu1 %1024 }
 0x16b   : > { %4900 = vst [vmem:[#allocation93_spill] sm:$0xff] %v3538_v42 }
 0x16c   : > { %810 = vperm.xlu0 %2757, %v733_v2   ;;  %v3541_v17 = vpop.permute.xlu0 %1270 }
 0x16d   : > { %4901 = vst [vmem:[#allocation94_spill] sm:$0xff] %v3541_v17  ;;  %1433 = vperm.xlu1 %2732, %v3298_v22   ;;  %v741_v17 = vadd.s32 12, %v3081_v33  ;;  %v2009_v33 = vld [vmem:[%s4770_s2 + $0x18] sm:$0xff] }
 0x16e   : > { %v3544_v48 = vpop.permute.xlu1 %1034 }
 0x16f   : > { %4902 = vst [vmem:[#allocation95_spill] sm:$0xff] %v3544_v48 }
 0x170   : > { %816 = vperm.xlu0 %2757, %v735_v23   ;;  %v3547_v19 = vpop.permute.xlu0 %1278 }
 0x171   : > { %4903 = vst [vmem:[#allocation96_spill] sm:$0xff] %v3547_v19  ;;  %1441 = vperm.xlu1 %2732, %v3281_v30  }
 0x172   : > { %v3550_v13 = vpop.permute.xlu1 %1044 }
 0x173   : > { %4904 = vst [vmem:[#allocation97_spill] sm:$0xff] %v3550_v13 }
 0x174   : > { %822 = vperm.xlu0 %2757, %v737_v25   ;;  %v3553_v27 = vpop.permute.xlu0 %1286  ;;  %v2007_v25 = vld [vmem:[%s4770_s2 + $0x8] sm:$0xff] }
 0x175   : > { %4905 = vst [vmem:[#allocation98_spill] sm:$0xff] %v3553_v27  ;;  %1449 = vperm.xlu1 %2732, %v3290_v32   ;;  %v2008_v27 = vld [vmem:[%s4770_s2 + $0x10] sm:$0xff] }
 0x176   : > { %v3556_v2 = vpop.permute.xlu1 %1054 }
 0x177   : > { %4906 = vst [vmem:[#allocation99_spill] sm:$0xff] %v3556_v2 }
 0x178   : > { %828 = vperm.xlu0 %2757, %v739_v21   ;;  %v3559_v29 = vpop.permute.xlu0 %1294  ;;  %v2670_v21 = vpack.c.bf16 %v2009_v33, %v2007_v25  ;;  %v2011_v25 = vld [vmem:[%s4770_s2 + $0x28] sm:$0xff] }
 0x179   : > { %1457 = vperm.xlu1 %2732, %v3302_v4  }
 0x17a   : > { %v3562_v23 = vpop.permute.xlu1 %1064  ;;  %2671 = vmatprep.subr.bf16.mxu0 %v2670_v21  ;;  %2674 = vmatprep.subr.bf16.mxu1 %v2670_v21  ;;  %v4916_v21 = vmov 4  }
 0x17b   : > { %4907 = vst [vmem:[#allocation100_spill] sm:$0xff] %v3562_v23 }
 0x17c   : > { %834 = vperm.xlu0 %2757, %v741_v17   ;;  %v3564_v19 = vpop.permute.xlu0 %1302  ;;  %v2006_v17 = vld [vmem:[%s4770_s2] sm:$0xff] }
 0x17d   : > { %4908 = vst [vmem:[#allocation101_spill] sm:$0xff] %v3564_v19  ;;  %1489 = vperm.xlu1 %2732, %v3338_v52   ;;  %v2672_v23 = vpack.c.bf16 %v2008_v27, %v2006_v17  ;;  %v2010_v27 = vld [vmem:[%s4770_s2 + $0x20] sm:$0xff] }
 0x17e   : > { %v3567_v31 = vpop.permute.xlu1 %1074 }
 0x17f   : > { %4909 = vst [vmem:[#allocation102_spill] sm:$0xff] %v3567_v31  ;;  %v4911_v31 = vmov 3   ;;  %2673 = vmatpush1.bf16.msra.mxu0 %v2672_v23  ;;  %2676 = vmatpush1.bf16.msra.mxu1 %v2672_v23 }
 0x180   : > { %1425 = vperm.xlu0 %2757, %v3093_v34   ;;  %v3576_v4 = vpop.permute.xlu0 %1310  ;;  %2113 = vmatprep.subr.mxu0 %v2011_v25 }
 0x181   : > { %4910 = vst [vmem:[#allocation103_spill] sm:$0xff] %v3576_v4  ;;  %2734 = vset.pattern.permute.xlu1 %v4911_v31  ;;  %2675 = vmatprep.subr.mxu1 %v2011_v25 }
 0x182   : > { %1684 = vperm.xlu1 %2734, %v3338_v52   ;;  %v3586_v2 = vpop.permute.xlu1 %1084 }
 0x183   : > { %2114 = vmatpush1.msra.mxu0 %v2010_v27  ;;  %2677 = vmatpush1.msra.mxu1 %v2010_v27 }
 0x184   : > { %1437 = vperm.xlu0 %2757, %v3099_v37   ;;  %v3589_v34 = vpop.permute.xlu0 %1318 }
 0x185   : > { %4912 = vst [vmem:[#allocation104_spill] sm:$0xff] %v3589_v34 }
 0x186   : > { %2735 = vset.pattern.permute.xlu1 %v4886_v40  ;;  %v3595_v33 = vpop.permute.xlu1 %1094 }
 0x187   : > { %4913 = vst [vmem:[#allocation105_spill] sm:$0xff] %v3595_v33  ;;  %1493 = vperm.xlu1 %2735, %v3134_v51   ;;  %v4971_v33 = vld [vmem:[#allocation59_spill] sm:$0xff] }
 0x188   : > { %1445 = vperm.xlu0 %2757, %v3104_v39   ;;  %v3602_v37 = vpop.permute.xlu0 %1326 }
 0x189   : > { %4914 = vst [vmem:[#allocation106_spill] sm:$0xff] %v3602_v37 }
 0x18a   : > { %v3604_v23 = vpop.permute.xlu1 %1104 }
 0x18b   : > { %4915 = vst [vmem:[#allocation107_spill] sm:$0xff] %v3604_v23  ;;  %2736 = vset.pattern.permute.xlu1 %v4916_v21 }
 0x18c   : > { %1879 = vperm.xlu1 %2736, %v3338_v52   ;;  %1453 = vperm.xlu0 %2757, %v3109_v41   ;;  %v3609_v17 = vpop.permute.xlu0 %1334 }
 0x18d   : > { %4917 = vst [vmem:[#allocation108_spill] sm:$0xff] %v3609_v17 }
 0x18e   : > { %v3611_v13 = vpop.permute.xlu1 %1114 }
 0x18f   : > { %4918 = vst [vmem:[#allocation109_spill] sm:$0xff] %v3611_v13 }
 0x190   : > { %2737 = vset.pattern.permute.xlu1 %v4911_v31  ;;  %1461 = vperm.xlu0 %2757, %v3114_v43   ;;  %v3615_v51 = vpop.permute.xlu0 %1342 }
 0x191   : > { %4919 = vst [vmem:[#allocation110_spill] sm:$0xff] %v3615_v51  ;;  %1624 = vperm.xlu1 %2737, %v3272_v28   ;;  %v4968_v51 = vld [vmem:[#allocation44_spill] sm:$0xff] }
 0x192   : > { %v3618_v25 = vpop.permute.xlu1 %1124 }
 0x193   : > { %4920 = vst [vmem:[#allocation111_spill] sm:$0xff] %v3618_v25 }
 0x194   : > { %1501 = vperm.xlu0 %2757, %v3139_v53   ;;  %v3621_v27 = vpop.permute.xlu0 %1350 }
 0x195   : > { %4921 = vst [vmem:[#allocation112_spill] sm:$0xff] %v3621_v27  ;;  %2738 = vset.pattern.permute.xlu1 %v4886_v40 }
 0x196   : > { %1497 = vperm.xlu1 %2738, %v3347_v12   ;;  %v3625_v41 = vpop.permute.xlu1 %1134 }
 0x198   : > { %1513 = vperm.xlu0 %2757, %v3365_v10  }
 0x199   : > { %v3628_v52 = vpop.permute.xlu0 %1620 }
 0x19a   : > { %2739 = vset.pattern.permute.xlu1 %v4916_v21  ;;  %v3631_v37 = vpop.permute.xlu1 %1144 }
 0x19b   : > { %4922 = vst [vmem:[#allocation113_spill] sm:$0xff] %v3631_v37  ;;  %1819 = vperm.xlu1 %2739, %v3272_v28   ;;  %v4975_v37 = vld [vmem:[#allocation62_spill] sm:$0xff] }
 0x19c   : > { %1525 = vperm.xlu0 %2757, %v3154_v59  }
 0x19d   : > { %v3635_v25 = vpop.permute.xlu0 %1688 }
 0x19e   : > { %v3637_v34 = vpop.permute.xlu1 %1154 }
 0x19f   : > { %4923 = vst [vmem:[#allocation114_spill] sm:$0xff] %v3637_v34  ;;  %2740 = vset.pattern.permute.xlu1 %v4911_v31 }
 0x1a0   : > { %1628 = vperm.xlu1 %2740, %v3298_v22   ;;  %1529 = vperm.xlu0 %2757, %v3383_v58  }
 0x1a1   : > { %v3642_v13 = vpop.permute.xlu0 %1632 }
 0x1a3   : > { %v3644_v42 = vpop.permute.xlu1 %1230 }
 0x1a4   : > { %1692 = vperm.xlu1 %2740, %v3347_v12   ;;  %1533 = vperm.xlu0 %2757, %v3159_v61  }
 0x1a5   : > { %v3648_v28 = vpop.permute.xlu0 %1700 }
 0x1a6   : > { %4924 = vst [vmem:[#allocation115_spill] sm:$0xff] %v3648_v28 }
 0x1a7   : > { %v3650_v59 = vpop.permute.xlu1 %1238 }
 0x1a8   : > { %4925 = vst [vmem:[#allocation116_spill] sm:$0xff] %v3650_v59  ;;  %2741 = vset.pattern.permute.xlu1 %v4916_v21  ;;  %1537 = vperm.xlu0 %2757, %v3392_v56   ;;  %v4980_v59 = vld [vmem:[#allocation66_spill] sm:$0xff] }
 0x1a9   : > { %1823 = vperm.xlu1 %2741, %v3298_v22  }
 0x1aa   : > { %v3655_v4 = vpop.permute.xlu0 %1815 }
 0x1ab   : > { %v3657_v58 = vpop.permute.xlu1 %1242 }
 0x1ac   : > { %1541 = vperm.xlu0 %2757, %v3164_v63  }
 0x1ad   : > { %1887 = vperm.xlu1 %2741, %v3347_v12  }
 0x1ae   : > { %v3661_v23 = vpop.permute.xlu0 %1883 }
 0x1af   : > { %v3663_v61 = vpop.permute.xlu1 %1250 }
 0x1b0   : > { %4926 = vst [vmem:[#allocation117_spill] sm:$0xff] %v3663_v61  ;;  %1545 = vperm.xlu0 %2757, %v3401_v54   ;;  %v194_v61 = vlaneseq }
 0x1b1   : > { %2742 = vset.pattern.permute.xlu1 %v4911_v31 }
 0x1b2   : > { %1696 = vperm.xlu1 %2742, %v3139_v53   ;;  %v3668_v56 = vpop.permute.xlu0 %1827  ;;  %v3686_v48 = vand.u32 127, %v194_v61 }
 0x1b3   : > { %v3670_v22 = vpop.permute.xlu1 %1258 }
 0x1b4   : > { %1549 = vperm.xlu0 %2757, %v3169_v38   ;;  %vm331_vm0 = vcmp.eq.s32.totalorder %v3686_v48, %v3191_v35  ;;  %vm196_vm1 = vcmp.eq.s32.totalorder %v3686_v48, 20  ;;  %vm333_vm2 = vcmp.eq.s32.totalorder %v3686_v48, %v3197_v44  ;;  %vm587_vm3 = vcmp.eq.s32.totalorder %v3686_v48, %v3295_v60 }
 0x1b5   : > { %vm335_vm4 = vcmp.eq.s32.totalorder %v3686_v48, %v3203_v1  ;;  %vm589_vm5 = vcmp.eq.s32.totalorder %v3686_v48, %v3307_v26  ;;  %vm337_vm7 = vcmp.eq.s32.totalorder %v3686_v48, %v3209_v50  ;;  %vm591_vm8 = vcmp.eq.s32.totalorder %v3686_v48, %v3316_v8 }
 0x1b6   : > { %2743 = vset.pattern.permute.xlu1 %v4886_v40  ;;  %v3674_v63 = vpop.permute.xlu0 %1895  ;;  %vm339_vm10 = vcmp.eq.s32.totalorder %v3686_v48, %v3215_v36  ;;  %vm593_vm11 = vcmp.eq.s32.totalorder %v3686_v48, %v3325_v20  ;;  %vm341_vm13 = vcmp.eq.s32.totalorder %v3686_v48, %v3221_v0  ;;  %vm595_vm14 = vcmp.eq.s32.totalorder %v3686_v48, %v3334_v18  ;;  %v4940_v18 = vld [vmem:[#allocation39_spill] sm:$0xff] }
 0x1b7   : > { %4927 = vst [vmem:[#allocation118_spill] sm:$0xff] %v3674_v63  ;;  %1505 = vperm.xlu1 %2743, %v3356_v6   ;;  %v3677_v12 = vpop.permute.xlu1 %1266 }
 0x1b8   : > { %2777 = vset.pattern.permute.xlu0 %v4911_v31 }
 0x1b9   : > { %1644 = vperm.xlu0 %2777, %v3290_v32   ;;  %v4932_v32 = vmov 0.0  }
 0x1ba   : > { %v3681_v54 = vpop.permute.xlu0 %1839  ;;  %v2569_v50 = vsel %vm591_vm8, 1.0, %v4932_v32  ;;  %v2571_v36 = vsel %vm593_vm11, 1.0, %v4932_v32  ;;  %v2573_v0 = vsel %vm595_vm14, 1.0, %v4932_v32  ;;  %vm967_vm8 = vcmp.eq.s32.totalorder %v3686_v48, 15 }
 0x1bb   : > { %4928 = vst [vmem:[#allocation119_spill] sm:$0xff] %v3681_v54  ;;  %2744 = vset.pattern.permute.xlu1 %v4916_v21  ;;  %v3684_v28 = vpop.permute.xlu1 %1274  ;;  %v2533_v54 = vsel %vm331_vm0, 1.0, %v4932_v32 }
 0x1bc   : > { %4929 = vst [vmem:[#allocation120_spill] sm:$0xff] %v3684_v28  ;;  %1891 = vperm.xlu1 %2744, %v3139_v53   ;;  %v3706_v53 = vsel %vm196_vm1, 1.0, %v4932_v32  ;;  %v2565_v28 = vsel %vm587_vm3, 1.0, %v4932_v32 }
 0x1bd   : > { %1712 = vperm.xlu0 %2777, %v3149_v57   ;;  %v427_v61 = vadd.f32 %v2533_v54, %v3706_v53 }
 0x1be   : > { %v3692_v6 = vpop.permute.xlu0 %1907 }
 0x1bf   : > { %4930 = vst [vmem:[#allocation121_spill] sm:$0xff] %v3692_v6  ;;  %v3694_v63 = vpop.permute.xlu1 %1282  ;;  %v683_v54 = vadd.f32 %v2565_v28, %v427_v61 }
 0x1c0   : > { %4931 = vst [vmem:[#allocation122_spill] sm:$0xff] %v3694_v63  ;;  %2745 = vset.pattern.permute.xlu1 %v4911_v31  ;;  %v2535_v63 = vsel %vm333_vm2, 1.0, %v4932_v32 }
 0x1c1   : > { %1636 = vperm.xlu1 %2745, %v3281_v30   ;;  %1656 = vperm.xlu0 %2777, %v3114_v43   ;;  %v429_v60 = vadd.f32 %v2535_v63, %v3706_v53 }
 0x1c3   : > { %v3708_v57 = vpop.permute.xlu1 %1290  ;;  %v3710_v35 = vpop.permute.xlu0 %747 }
 0x1c4   : > { %4933 = vst [vmem:[#allocation123_spill] sm:$0xff] %v3708_v57  ;;  %v2537_v57 = vsel %vm335_vm4, 1.0, %v4932_v32 }
 0x1c5   : > { %2747 = vset.pattern.permute.xlu1 %v4886_v40  ;;  %1660 = vperm.xlu0 %2777, %v3311_v14   ;;  %v2567_v14 = vsel %vm589_vm5, 1.0, %v4932_v32  ;;  %v431_v63 = vadd.f32 %v2537_v57, %v3706_v53 }
 0x1c6   : > { %1509 = vperm.xlu1 %2747, %v3144_v55   ;;  %v685_v61 = vadd.f32 %v2567_v14, %v429_v60 }
 0x1c7   : > { %v3722_v43 = vpop.permute.xlu1 %1298  ;;  %v757_v44 = vpop.permute.xlu0 %756  ;;  %v687_v60 = vadd.f32 %v2569_v50, %v431_v63 }
 0x1c8   : > { %vm843_vm6 = vcmp.eq.s32.totalorder %v3686_v48, %v757_v44 }
 0x1c9   : > { %v2597_v6 = vsel %vm843_vm6, 1.0, %v4932_v32  ;;  %1664 = vperm.xlu0 %2777, %v3119_v45   ;;  %v2539_v45 = vsel %vm337_vm7, 1.0, %v4932_v32 }
 0x1ca   : > { %v3734_v1 = vadd.f32 %v2597_v6, %v683_v54  ;;  %2748 = vset.pattern.permute.xlu1 %v4916_v21  ;;  %v433_v44 = vadd.f32 %v2539_v45, %v3706_v53  ;;  %v4941_v45 = vld [vmem:[#allocation42_spill] sm:$0xff] }
 0x1cb   : > { %1831 = vperm.xlu1 %2748, %v3281_v30   ;;  %v3738_v26 = vpop.permute.xlu1 %1306  ;;  %v763_v28 = vpop.permute.xlu0 %762  ;;  %vm597_vm0 = vcmp.eq.s32.totalorder %v3686_v48, %v4941_v45  ;;  %v4947_v45 = vld [vmem:[#allocation6_spill] sm:$0xff] }
 0x1cc   : > { %4934 = vst [vmem:[#allocation124_spill] sm:$0xff] %v3734_v1  ;;  %4935 = vst [vmem:[#allocation125_spill] sm:$0xff] %v3738_v26  ;;  %vm845_vm9 = vcmp.eq.s32.totalorder %v3686_v48, %v763_v28  ;;  %v689_v63 = vadd.f32 %v2571_v36, %v433_v44  ;;  %vm327_vm3 = vcmp.eq.s32.totalorder %v3686_v48, %v4947_v45  ;;  %v4954_v45 = vld [vmem:[#allocation51_spill] sm:$0xff]  ;;  %v4960_v1 = vld [vmem:[#allocation28_spill] sm:$0xff] }
 0x1cd   : > { %v2599_v8 = vsel %vm845_vm9, 1.0, %v4932_v32  ;;  %1668 = vperm.xlu0 %2777, %v3320_v3   ;;  %v2541_v3 = vsel %vm339_vm10, 1.0, %v4932_v32  ;;  %vm605_vm10 = vcmp.eq.s32.totalorder %v3686_v48, %v4954_v45 }
 0x1ce   : > { %v3750_v30 = vadd.f32 %v2599_v8, %v685_v61 }
 0x1cf   : > { %2749 = vset.pattern.permute.xlu1 %v4911_v31  ;;  %v3753_v6 = vpop.permute.xlu1 %1314  ;;  %v769_v57 = vpop.permute.xlu0 %768 }
 0x1d0   : > { %4936 = vst [vmem:[#allocation126_spill] sm:$0xff] %v3750_v30  ;;  %4937 = vst [vmem:[#allocation127_spill] sm:$0xff] %v3753_v6  ;;  %vm847_vm12 = vcmp.eq.s32.totalorder %v3686_v48, %v769_v57  ;;  %1640 = vperm.xlu1 %2749, %v3104_v39   ;;  %v435_v39 = vadd.f32 %v2541_v3, %v3706_v53  ;;  %v2575_v3 = vsel %vm597_vm0, 1.0, %v4932_v32  ;;  %v4962_v30 = vld [vmem:[#allocation60_spill] sm:$0xff] }
 0x1d1   : > { %v2601_v20 = vsel %vm847_vm12, 1.0, %v4932_v32  ;;  %1672 = vperm.xlu0 %2777, %v3124_v47   ;;  %v2543_v47 = vsel %vm341_vm13, 1.0, %v4932_v32 }
 0x1d2   : > { %v3766_v54 = vadd.f32 %v2601_v20, %v687_v60  ;;  %v437_v44 = vadd.f32 %v2543_v47, %v3706_v53  ;;  %v691_v60 = vadd.f32 %v2573_v0, %v435_v39  ;;  %v2782_v20 = vld [vmem:[%s3088_s4 + $0x28] sm:$0xff] }
 0x1d3   : > { %v3768_v14 = vpop.permute.xlu1 %1322  ;;  %v775_v28 = vpop.permute.xlu0 %774 }
 0x1d4   : > { %4938 = vst [vmem:[#allocation128_spill] sm:$0xff] %v3766_v54  ;;  %4939 = vst [vmem:[#allocation129_spill] sm:$0xff] %v3768_v14  ;;  %vm849_vm15 = vcmp.eq.s32.totalorder %v3686_v48, %v775_v28  ;;  %1704 = vperm.xlu1 %2749, %v3144_v55  }
 0x1d5   : > { %v2603_v61 = vsel %vm849_vm15, 1.0, %v4932_v32  ;;  %1676 = vperm.xlu0 %2777, %v4940_v18   ;;  %v693_v18 = vadd.f32 %v2575_v3, %v437_v44  ;;  %v4950_v44 = vld [vmem:[#allocation8_spill] sm:$0xff]  ;;  %v2529_v3 = vsel %vm327_vm3, 1.0, %v4932_v32  ;;  %vm355_vm15 = vcmp.eq.s32.totalorder %v3686_v48, %v4960_v1 }
 0x1d6   : > { %v3779_v50 = vadd.f32 %v2603_v61, %v689_v63  ;;  %vm328_vm6 = vcmp.eq.s32.totalorder %v3686_v48, %v4950_v44  ;;  %v4955_v44 = vld [vmem:[#allocation11_spill] sm:$0xff] }
 0x1d7   : > { %v3781_v8 = vpop.permute.xlu1 %1330  ;;  %v781_v57 = vpop.permute.xlu0 %780  ;;  %vm336_vm11 = vcmp.eq.s32.totalorder %v3686_v48, %v4955_v44 }
 0x1d8   : > { %4942 = vst [vmem:[#allocation39_spill] sm:$0xff] %v3779_v50  ;;  %vm851_vm1 = vcmp.eq.s32.totalorder %v3686_v48, %v781_v57  ;;  %2750 = vset.pattern.permute.xlu1 %v4916_v21  ;;  %v4948_v57 = vld [vmem:[#allocation22_spill] sm:$0xff]  ;;  %v4958_v50 = vld [vmem:[#allocation16_spill] sm:$0xff] }
 0x1d9   : > { %v2605_v36 = vsel %vm851_vm1, 1.0, %v4932_v32  ;;  %1835 = vperm.xlu1 %2750, %v2782_v20   ;;  %1680 = vperm.xlu0 %2777, %v3129_v49   ;;  %vm349_vm4 = vcmp.eq.s32.totalorder %v3686_v48, %v4948_v57  ;;  %v423_v57 = vadd.f32 %v2529_v3, %v3706_v53  ;;  %vm343_vm13 = vcmp.eq.s32.totalorder %v3686_v48, %v4958_v50 }
 0x1da   : > { %v3790_v28 = vadd.f32 %v2605_v36, %v691_v60  ;;  %v4952_v36 = vld [vmem:[#allocation10_spill] sm:$0xff]  ;;  %v2551_v20 = vsel %vm349_vm4, 1.0, %v4932_v32  ;;  %v2583_v50 = vsel %vm605_vm10, 1.0, %v4932_v32  ;;  %vm583_vm1 = vcmp.eq.s32.totalorder %v3686_v48, %v4962_v30 }
 0x1db   : > { %v3792_v63 = vpop.permute.xlu1 %1338  ;;  %v787_v61 = vpop.permute.xlu0 %786  ;;  %vm334_vm7 = vcmp.eq.s32.totalorder %v3686_v48, %v4952_v36  ;;  %v3836_v36 = vsel %vm967_vm8, 1.0, %v4932_v32  ;;  %v445_v3 = vadd.f32 %v2551_v20, %v3706_v53  ;;  %v2538_v20 = vsel %vm336_vm11, 1.0, %v4932_v32 }
 0x1dc   : > { %4943 = vst [vmem:[#allocation42_spill] sm:$0xff] %v3790_v28  ;;  %4944 = vst [vmem:[#allocation130_spill] sm:$0xff] %v3792_v63  ;;  %vm853_vm2 = vcmp.eq.s32.totalorder %v3686_v48, %v787_v61  ;;  %v4953_v61 = vld [vmem:[#allocation24_spill] sm:$0xff]  ;;  %v4957_v28 = vld [vmem:[#allocation15_spill] sm:$0xff]  ;;  %v2557_v30 = vsel %vm355_vm15, 1.0, %v4932_v32  ;;  %vm586_vm10 = vcmp.eq.s32.totalorder %v3686_v48, %v4975_v37  ;;  %vm1226_vm11 = vcmp.eq.s32.totalorder %v3686_v48, 16 }
 0x1dd   : > { %v2607_v39 = vsel %vm853_vm2, 1.0, %v4932_v32  ;;  %1899 = vperm.xlu1 %2750, %v3144_v55   ;;  %2781 = vset.pattern.permute.xlu0 %v4916_v21  ;;  %v4949_v55 = vld [vmem:[#allocation7_spill] sm:$0xff]  ;;  %vm351_vm9 = vcmp.eq.s32.totalorder %v3686_v48, %v4953_v61  ;;  %v2783_v61 = vld [vmem:[%s3088_s4 + $0xb8] sm:$0xff]  ;;  %vm344_vm12 = vcmp.eq.s32.totalorder %v3686_v48, %v4957_v28  ;;  %v701_v1 = vadd.f32 %v2583_v50, %v445_v3 }
 0x1de   : > { %v3798_v47 = vadd.f32 %v2607_v39, %v693_v18  ;;  %1939 = vperm.xlu0 %2781, %v3169_v38   ;;  %vm330_vm5 = vcmp.eq.s32.totalorder %v3686_v48, %v4949_v55  ;;  %v2530_v39 = vsel %vm328_vm6, 1.0, %v4932_v32  ;;  %v2536_v55 = vsel %vm334_vm7, 1.0, %v4932_v32 }
 0x1df   : > { %v3801_v0 = vpop.permute.xlu1 %1346  ;;  %v3803_v49 = vpop.permute.xlu0 %792  ;;  %v2532_v18 = vsel %vm330_vm5, 1.0, %v4932_v32  ;;  %v2553_v54 = vsel %vm351_vm9, 1.0, %v4932_v32  ;;  %v3853_v6 = vadd.f32 %v2530_v39, %v3706_v53  ;;  %v3862_v28 = vadd.f32 %v2536_v55, %v3706_v53 }
 0x1e0   : > { %4945 = vst [vmem:[#allocation131_spill] sm:$0xff] %v3798_v47  ;;  %4946 = vst [vmem:[#allocation132_spill] sm:$0xff] %v3801_v0  ;;  %v3850_v44 = vadd.f32 %v2532_v18, %v3706_v53  ;;  %v4961_v18 = vld [vmem:[#allocation53_spill] sm:$0xff]  ;;  %v2546_v39 = vsel %vm344_vm12, 1.0, %v4932_v32  ;;  %v447_v26 = vadd.f32 %v2553_v54, %v3706_v53  ;;  %v3883_v54 = vadd.f32 %v2538_v20, %v3706_v53 }
 0x1e1   : > { %2751 = vset.pattern.permute.xlu1 %v4911_v31  ;;  %vm607_vm0 = vcmp.eq.s32.totalorder %v3686_v48, %v4961_v18  ;;  %v2561_v3 = vsel %vm583_vm1, 1.0, %v4932_v32  ;;  %v4967_v0 = vld [vmem:[#allocation61_spill] sm:$0xff]  ;;  %vm599_vm6 = vcmp.eq.s32.totalorder %v3686_v48, %v4968_v51  ;;  %vm613_vm9 = vcmp.eq.s32.totalorder %v3686_v48, %v4971_v33  ;;  %v4977_v51 = vld [vmem:[#allocation36_spill] sm:$0xff] }
 0x1e2   : > { %1708 = vperm.xlu1 %2751, %v3365_v10   ;;  %v2585_v27 = vsel %vm607_vm0, 1.0, %v4932_v32  ;;  %vm839_vm5 = vcmp.eq.s32.totalorder %v3686_v48, %v4967_v0  ;;  %v2577_v0 = vsel %vm599_vm6, 1.0, %v4932_v32  ;;  %v2591_v37 = vsel %vm613_vm9, 1.0, %v4932_v32 }
 0x1e3   : > { %v3815_v38 = vpop.permute.xlu1 %1354  ;;  %v3817_v60 = vpop.permute.xlu0 %798  ;;  %vm590_vm15 = vcmp.eq.s32.totalorder %v3686_v48, %v4980_v59  ;;  %vm846_vm0 = vcmp.eq.s32.totalorder %v3686_v48, %v4981_v16  ;;  %vm1811_vm6 = vcmp.eq.s32.totalorder %v3686_v48, 19 }
 0x1e4   : > { %4951 = vst [vmem:[#allocation6_spill] sm:$0xff] %v3815_v38  ;;  %v4963_v38 = vld [vmem:[#allocation30_spill] sm:$0xff] }
 0x1e5   : > { %vm357_vm2 = vcmp.eq.s32.totalorder %v3686_v48, %v4963_v38  ;;  %v4965_v38 = vld [vmem:[#allocation55_spill] sm:$0xff] }
 0x1e6   : > { %2752 = vset.pattern.permute.xlu1 %v4886_v40  ;;  %vm609_vm4 = vcmp.eq.s32.totalorder %v3686_v48, %v4965_v38  ;;  %v703_v38 = vadd.f32 %v2585_v27, %v447_v26  ;;  %v4973_v26 = vld [vmem:[#allocation31_spill] sm:$0xff] }
 0x1e7   : > { %1517 = vperm.xlu1 %2752, %v2783_v61   ;;  %v3839_v47 = vpop.permute.xlu0 %804  ;;  %v4959_v61 = vld [vmem:[#allocation26_spill] sm:$0xff] }
 0x1e8   : > { %4956 = vst [vmem:[#allocation22_spill] sm:$0xff] %v3839_v47  ;;  %v3847_v14 = vpop.permute.xlu1 %1429  ;;  %vm353_vm14 = vcmp.eq.s32.totalorder %v3686_v48, %v4959_v61  ;;  %v2545_v61 = vsel %vm343_vm13, 1.0, %v4932_v32  ;;  %v3889_v47 = vadd.f32 %v2546_v39, %v3706_v53  ;;  %v451_v39 = vadd.f32 %v2557_v30, %v3706_v53 }
 0x1e9   : > { %v2555_v55 = vsel %vm353_vm14, 1.0, %v4932_v32  ;;  %v439_v50 = vadd.f32 %v2545_v61, %v3706_v53  ;;  %v2587_v61 = vsel %vm609_vm4, 1.0, %v4932_v32  ;;  %vm1616_vm13 = vcmp.eq.s32.totalorder %v3686_v48, 18 }
 0x1ea   : > { %v449_v20 = vadd.f32 %v2555_v55, %v3706_v53  ;;  %v4970_v55 = vld [vmem:[#allocation57_spill] sm:$0xff]  ;;  %v3964_v46 = vsel %vm1616_vm13, 1.0, %v4932_v32  ;;  %vm2012_vm13 = vcmask 195584  }
 0x1eb   : > { %2753 = vset.pattern.permute.xlu1 %v4916_v21  ;;  %v811_v45 = vpop.permute.xlu0 %810  ;;  %vm611_vm8 = vcmp.eq.s32.totalorder %v3686_v48, %v4970_v55  ;;  %v3952_v55 = vsel %vm1226_vm11, 1.0, %v4932_v32  ;;  %vm848_vm11 = vcmp.eq.s32.totalorder %v3686_v48, %v4991_v11 }
 0x1ec   : > { %vm861_vm3 = vcmp.eq.s32.totalorder %v3686_v48, %v811_v45  ;;  %1903 = vperm.xlu1 %2753, %v3365_v10   ;;  %v3880_v18 = vpop.permute.xlu1 %1433  ;;  %v2559_v45 = vsel %vm357_vm2, 1.0, %v4932_v32 }
 0x1ed   : > { %4964 = vst [vmem:[#allocation7_spill] sm:$0xff] %v3880_v18  ;;  %v2615_v34 = vsel %vm861_vm3, 1.0, %v4932_v32  ;;  %v2784_v18 = vld [vmem:[%s3088_s4 + $0x38] sm:$0xff]  ;;  %v453_v30 = vadd.f32 %v2559_v45, %v3706_v53  ;;  %v2589_v45 = vsel %vm611_vm8, 1.0, %v4932_v32  ;;  %vm855_vm3 = vcmp.eq.s32.totalorder %v3686_v48, %v3803_v49 }
 0x1ee   : > { %v3894_v10 = vadd.f32 %v2615_v34, %v701_v1  ;;  %v679_v1 = vadd.f32 %v2561_v3, %v423_v57  ;;  %v4974_v57 = vld [vmem:[#allocation33_spill] sm:$0xff]  ;;  %v1747_v49 = vmul.f32 %v3964_v46, %v3628_v52 }
 0x1ef   : > { %v817_v19 = vpop.permute.xlu0 %816  ;;  %v3926_v3 = vmul.f32 %v3836_v36, %v4974_v57 }
 0x1f0   : > { %4966 = vst [vmem:[#allocation8_spill] sm:$0xff] %v3894_v10  ;;  %vm863_vm7 = vcmp.eq.s32.totalorder %v3686_v48, %v817_v19  ;;  %2754 = vset.pattern.permute.xlu1 %v4911_v31  ;;  %v3906_v34 = vpop.permute.xlu1 %1441  ;;  %v2593_v19 = vsel %vm839_vm5, 1.0, %v4932_v32 }
 0x1f1   : > { %4969 = vst [vmem:[#allocation10_spill] sm:$0xff] %v3906_v34  ;;  %v2617_v10 = vsel %vm863_vm7, 1.0, %v4932_v32  ;;  %1648 = vperm.xlu1 %2754, %v2784_v18   ;;  %v1162_v34 = vmul.f32 %v3836_v36, %v4973_v26  ;;  %v935_v26 = vadd.f32 %v2593_v19, %v679_v1  ;;  %v695_v1 = vadd.f32 %v2577_v0, %v439_v50 }
 0x1f2   : > { %v3920_v27 = vadd.f32 %v2617_v10, %v703_v38  ;;  %v705_v10 = vadd.f32 %v2587_v61, %v449_v20  ;;  %v3948_v20 = vmul.f32 %v3836_v36, %v4977_v51  ;;  %v2564_v61 = vsel %vm586_vm10, 1.0, %v4932_v32 }
 0x1f3   : > { %v823_v33 = vpop.permute.xlu0 %822  ;;  %v707_v19 = vadd.f32 %v2589_v45, %v451_v39  ;;  %v709_v51 = vadd.f32 %v2591_v37, %v453_v30  ;;  %v682_v50 = vadd.f32 %v2564_v61, %v3850_v44  ;;  %v4983_v39 = vld [vmem:[#allocation76_spill] sm:$0xff]  ;;  %v1194_v0 = vadd.f32 %v1162_v34, %v935_v26  ;;  %v4987_v61 = vld [vmem:[#allocation5_spill] sm:$0xff] }
 0x1f4   : > { %4972 = vst [vmem:[#allocation24_spill] sm:$0xff] %v3920_v27  ;;  %vm865_vm12 = vcmp.eq.s32.totalorder %v3686_v48, %v823_v33  ;;  %v3940_v38 = vpop.permute.xlu1 %1449  ;;  %v4978_v27 = vld [vmem:[#allocation49_spill] sm:$0xff]  ;;  %vm600_vm2 = vcmp.eq.s32.totalorder %v3686_v48, %v4983_v39  ;;  %v2568_v45 = vsel %vm590_vm15, 1.0, %v4932_v32  ;;  %v2600_v44 = vsel %vm846_vm0, 1.0, %v4932_v32 }
 0x1f5   : > { %4976 = vst [vmem:[#allocation51_spill] sm:$0xff] %v3940_v38  ;;  %v2619_v57 = vsel %vm865_vm12, 1.0, %v4932_v32  ;;  %2755 = vset.pattern.permute.xlu1 %v4886_v40  ;;  %v4979_v38 = vld [vmem:[#allocation65_spill] sm:$0xff]  ;;  %v2578_v37 = vsel %vm600_vm2, 1.0, %v4932_v32  ;;  %v1357_v26 = vmul.f32 %v3952_v55, %v3644_v42  ;;  %vm1421_vm7 = vcmp.eq.s32.totalorder %v3686_v48, 17 }
 0x1f6   : > { %v3954_v33 = vadd.f32 %v2619_v57, %v705_v10  ;;  %1521 = vperm.xlu1 %2755, %v4978_v27   ;;  %vm842_vm14 = vcmp.eq.s32.totalorder %v3686_v48, %v4979_v38  ;;  %v4986_v38 = vld [vmem:[#allocation79_spill] sm:$0xff]  ;;  %vm329_vm9 = vcmp.eq.s32.totalorder %v3686_v48, %v4987_v61  ;;  %v686_v39 = vadd.f32 %v2568_v45, %v3862_v28 }
 0x1f7   : > { %v829_v63 = vpop.permute.xlu0 %828  ;;  %v2596_v30 = vsel %vm842_vm14, 1.0, %v4932_v32  ;;  %vm856_vm5 = vcmp.eq.s32.totalorder %v3686_v48, %v4986_v38  ;;  %v4013_v45 = vsel %vm1421_vm7, 1.0, %v4932_v32  ;;  %vm840_vm14 = vcmp.eq.s32.totalorder %v3686_v48, %v3710_v35 }
 0x1f8   : > { %vm867_vm1 = vcmp.eq.s32.totalorder %v3686_v48, %v829_v63  ;;  %v3967_v10 = vpop.permute.xlu1 %1457  ;;  %v4985_v63 = vld [vmem:[#allocation68_spill] sm:$0xff]  ;;  %v2610_v38 = vsel %vm856_vm5, 1.0, %v4932_v32  ;;  %v942_v28 = vadd.f32 %v2600_v44, %v686_v39  ;;  %vm608_vm2 = vcmp.eq.s32.totalorder %v3686_v48, %v3493_v7  ;;  %v5000_v7 = vld [vmem:[#allocation34_spill] sm:$0xff] }
 0x1f9   : > { %4982 = vst [vmem:[#allocation11_spill] sm:$0xff] %v3967_v10  ;;  %v2621_v59 = vsel %vm867_vm1, 1.0, %v4932_v32  ;;  %vm592_vm4 = vcmp.eq.s32.totalorder %v3686_v48, %v4985_v63  ;;  %v1389_v10 = vadd.f32 %v1357_v26, %v1194_v0  ;;  %v4989_v44 = vld [vmem:[#allocation32_spill] sm:$0xff]  ;;  %vm585_vm7 = vcmp.eq.s32.totalorder %v3686_v48, %v5000_v7 }
 0x1fa   : > { %v3977_v16 = vadd.f32 %v2621_v59, %v707_v19  ;;  %2756 = vset.pattern.permute.xlu1 %v4916_v21  ;;  %v938_v19 = vadd.f32 %v2596_v30, %v682_v50  ;;  %v2570_v42 = vsel %vm592_vm4, 1.0, %v4932_v32  ;;  %v696_v30 = vadd.f32 %v2578_v37, %v3889_v47  ;;  %v4990_v47 = vld [vmem:[#allocation43_spill] sm:$0xff] }
 0x1fb   : > { %1843 = vperm.xlu1 %2756, %v2784_v18   ;;  %v835_v34 = vpop.permute.xlu0 %834  ;;  %v2609_v18 = vsel %vm855_vm3, 1.0, %v4932_v32  ;;  %vm584_vm10 = vcmp.eq.s32.totalorder %v3686_v48, %v4989_v44  ;;  %v1179_v52 = vmul.f32 %v3836_v36, %v4990_v47  ;;  %v688_v26 = vadd.f32 %v2570_v42, %v3883_v54  ;;  %v4994_v44 = vld [vmem:[#allocation23_spill] sm:$0xff] }
 0x1fc   : > { %4984 = vst [vmem:[#allocation15_spill] sm:$0xff] %v3977_v16  ;;  %vm869_vm8 = vcmp.eq.s32.totalorder %v3686_v48, %v835_v34  ;;  %v1490_v57 = vpop.permute.xlu1 %1489  ;;  %v4005_v34 = vsel %vm1811_vm6, 1.0, %v4932_v32  ;;  %v1360_v16 = vmul.f32 %v3952_v55, %v3657_v58  ;;  %v951_v17 = vadd.f32 %v2609_v18, %v695_v1 }
 0x1fd   : > { %v2623_v59 = vsel %vm869_vm8, 1.0, %v4932_v32  ;;  %v952_v37 = vadd.f32 %v2610_v38, %v696_v30  ;;  %v1197_v39 = vadd.f32 %v3926_v3, %v938_v19  ;;  %v1178_v58 = vmul.f32 %v3836_v36, %v3586_v2  ;;  %v4992_v30 = vld [vmem:[#allocation17_spill] sm:$0xff] }
 0x1fe   : > { %v4007_v50 = vadd.f32 %v2623_v59, %v709_v51  ;;  %v2785_v59 = vld [vmem:[%s3088_s4 + $0x40] sm:$0xff]  ;;  %v1942_v1 = vmul.f32 %v4005_v34, %v3655_v4  ;;  %v1750_v18 = vmul.f32 %v3964_v46, %v3642_v13  ;;  %v1201_v38 = vadd.f32 %v3948_v20, %v942_v28 }
 0x1ff   : > { %2758 = vset.pattern.permute.xlu1 %v4911_v31  ;;  %v1426_v63 = vpop.permute.xlu0 %1425  ;;  %v1374_v3 = vmul.f32 %v3952_v55, %v3722_v43  ;;  %vm346_vm12 = vcmp.eq.s32.totalorder %v3686_v48, %v4992_v30  ;;  %v1392_v11 = vadd.f32 %v1360_v16, %v1197_v39  ;;  %v1210_v2 = vadd.f32 %v1178_v58, %v951_v17 }
 0x200   : > { %4988 = vst [vmem:[#allocation16_spill] sm:$0xff] %v4007_v50  ;;  %v1552_v51 = vmul.f32 %v4013_v45, %v1426_v63  ;;  %1652 = vperm.xlu1 %2758, %v2785_v59   ;;  %v2602_v54 = vsel %vm848_vm11, 1.0, %v4932_v32  ;;  %v1373_v13 = vmul.f32 %v3952_v55, %v3559_v29  ;;  %v1211_v20 = vadd.f32 %v1179_v52, %v952_v37 }
 0x201   : > { %v1685_v50 = vpop.permute.xlu1 %1684  ;;  %v1945_v43 = vmul.f32 %v4005_v34, %v3668_v56  ;;  %v1764_v28 = vmul.f32 %v3964_v46, %v3635_v25  ;;  %v2531_v56 = vsel %vm329_vm9, 1.0, %v4932_v32  ;;  %v2562_v25 = vsel %vm584_vm10, 1.0, %v4932_v32 }
 0x202   : > { %v1584_v0 = vadd.f32 %v1552_v51, %v1389_v10  ;;  %v1568_v10 = vmul.f32 %v4013_v45, %v1490_v57  ;;  %v1405_v57 = vadd.f32 %v1373_v13, %v1210_v2  ;;  %v1763_v47 = vmul.f32 %v3964_v46, %v1685_v50  ;;  %v4993_v50 = vld [vmem:[#allocation37_spill] sm:$0xff]  ;;  %v4995_v2 = vld [vmem:[#allocation18_spill] sm:$0xff] }
 0x203   : > { %v1438_v19 = vpop.permute.xlu0 %1437  ;;  %v1171_v37 = vmul.f32 %v3836_v36, %v4993_v50  ;;  %v944_v39 = vadd.f32 %v2602_v54, %v688_v26  ;;  %vm352_vm15 = vcmp.eq.s32.totalorder %v3686_v48, %v4994_v44  ;;  %vm345_vm0 = vcmp.eq.s32.totalorder %v3686_v48, %v4995_v2 }
 0x204   : > { %v1779_v63 = vadd.f32 %v1747_v49, %v1584_v0  ;;  %v1555_v4 = vmul.f32 %v4013_v45, %v1438_v19  ;;  %1716 = vperm.xlu1 %2758, %v4978_v27   ;;  %v1364_v27 = vmul.f32 %v3952_v55, %v3670_v22  ;;  %v1406_v49 = vadd.f32 %v1374_v3, %v1211_v20 }
 0x205   : > { %v1959_v22 = vmul.f32 %v4005_v34, %v3661_v23  ;;  %v1600_v58 = vadd.f32 %v1568_v10, %v1405_v57  ;;  %v1366_v23 = vmul.f32 %v3952_v55, %v3677_v12  ;;  %v2594_v3 = vsel %vm840_vm14, 1.0, %v4932_v32 }
 0x206   : > { %v1974_v42 = vadd.f32 %v1942_v1, %v1779_v63  ;;  %v1587_v16 = vadd.f32 %v1555_v4, %v1392_v11  ;;  %v1494_v17 = vpop.permute.xlu1 %1493  ;;  %v1396_v0 = vadd.f32 %v1364_v27, %v1201_v38  ;;  %v4996_v63 = vld [vmem:[#allocation20_spill] sm:$0xff]  ;;  %v680_v38 = vadd.f32 %v2562_v25, %v3853_v6  ;;  %v2786_v4 = vld [vmem:[%s3088_s4 + $0xc0] sm:$0xff] }
 0x207   : > { %v1569_v51 = vmul.f32 %v4013_v45, %v1494_v17  ;;  %v4052_v29 = vpop.permute.xlu0 %1445  ;;  %v1795_v19 = vadd.f32 %v1763_v47, %v1600_v58  ;;  %vm347_vm1 = vcmp.eq.s32.totalorder %v3686_v48, %v4996_v63  ;;  %v1203_v54 = vadd.f32 %v1171_v37, %v944_v39  ;;  %v4999_v25 = vld [vmem:[#allocation29_spill] sm:$0xff] }
 0x208   : > { %v1782_v52 = vadd.f32 %v1750_v18, %v1587_v16  ;;  %2759 = vset.pattern.permute.xlu1 %v4916_v21  ;;  %2630 = vmatmul.mubr.msk.f32.vlgmr.msra.gmra.mrb[0].mxu0 %vm2012_vm13, %v1974_v42  ;;  %v2548_v10 = vsel %vm346_vm12, 1.0, %v4932_v32  ;;  %v2554_v6 = vsel %vm352_vm15, 1.0, %v4932_v32  ;;  %v936_v42 = vadd.f32 %v2594_v3, %v680_v38  ;;  %v4178_v38 = vld [vmem:[%s3088_s4 + $0x50] sm:$0xff] }
 0x209   : > { %v1601_v61 = vadd.f32 %v1569_v51, %v1406_v49  ;;  %1847 = vperm.xlu1 %2759, %v2785_v59   ;;  %2179 = vmatprep.mubr.f32.mxu0 %v4932_v32  ;;  %v2547_v17 = vsel %vm345_vm0, 1.0, %v4932_v32  ;;  %vm864_vm3 = vcmp.eq.s32.totalorder %v3686_v48, %v3501_v62  ;;  %v2549_v30 = vsel %vm347_vm1, 1.0, %v4932_v32  ;;  %v4997_v51 = vld [vmem:[#allocation25_spill] sm:$0xff] }
 0x20a   : > { %v4072_v1 = vadd.f32 %v1945_v43, %v1782_v52  ;;  %v425_v43 = vadd.f32 %v2531_v56, %v3706_v53  ;;  %vm354_vm4 = vcmp.eq.s32.totalorder %v3686_v48, %v4997_v51  ;;  %v2586_v56 = vsel %vm608_vm2, 1.0, %v4932_v32  ;;  %v4998_v52 = vld [vmem:[#allocation27_spill] sm:$0xff] }
 0x20b   : > { %v1796_v35 = vadd.f32 %v1764_v28, %v1601_v61  ;;  %v1880_v18 = vpop.permute.xlu1 %1879  ;;  %v1454_v59 = vpop.permute.xlu0 %1453  ;;  %v1398_v28 = vadd.f32 %v1366_v23, %v1203_v54  ;;  %v1163_v57 = vmul.f32 %v3836_v36, %v3525_v5  ;;  %v448_v47 = vadd.f32 %v2554_v6, %v3706_v53  ;;  %v4127_v61 = vld [vmem:[%s3088_s4 + $0xc8] sm:$0xff]  ;;  %v5002_v54 = vld [vmem:[#allocation52_spill] sm:$0xff] }
 0x20c   : > { %v1958_v11 = vmul.f32 %v4005_v34, %v1880_v18  ;;  %v1559_v26 = vmul.f32 %v4013_v45, %v1454_v59  ;;  %vm356_vm5 = vcmp.eq.s32.totalorder %v3686_v48, %v4998_v52  ;;  %vm358_vm6 = vcmp.eq.s32.totalorder %v3686_v48, %v4999_v25  ;;  %v5004_v25 = vld [vmem:[#allocation48_spill] sm:$0xff] }
 0x20d   : > { %1911 = vperm.xlu1 %2759, %v2786_v4   ;;  %v1991_v12 = vadd.f32 %v1959_v22, %v1796_v35  ;;  %v2618_v5 = vsel %vm864_vm3, 1.0, %v4932_v32  ;;  %v1358_v50 = vmul.f32 %v3952_v55, %v3517_v15  ;;  %v1195_v37 = vadd.f32 %v1163_v57, %v936_v42 }
 0x20e   : > { %v1990_v13 = vadd.f32 %v1958_v11, %v1795_v19  ;;  %v4089_v20 = vadd.f32 %v1559_v26, %v1396_v0  ;;  %v4141_v58 = vadd.f32 %v2548_v10, %v3706_v53  ;;  %v2556_v44 = vsel %vm354_vm4, 1.0, %v4932_v32  ;;  %v5001_v0 = vld [vmem:[#allocation46_spill] sm:$0xff] }
 0x20f   : > { %v1462_v16 = vpop.permute.xlu0 %1461  ;;  %vm601_vm8 = vcmp.eq.s32.totalorder %v3686_v48, %v5001_v0  ;;  %v704_v23 = vadd.f32 %v2586_v56, %v448_v47  ;;  %v441_v62 = vadd.f32 %v2547_v17, %v3706_v53  ;;  %v4152_v15 = vadd.f32 %v2549_v30, %v3706_v53 }
 0x210   : > { %v1561_v27 = vmul.f32 %v4013_v45, %v1462_v16  ;;  %v1625_v49 = vpop.permute.xlu1 %1624  ;;  %2646 = vmatmul.mubr.msk.f32.vlgmr.msra.gmra.mrb[0].mxu1 %vm2012_vm13, %v1990_v13  ;;  %v2558_v35 = vsel %vm356_vm5, 1.0, %v4932_v32  ;;  %v1553_v18 = vmul.f32 %v4013_v45, %v3847_v14  ;;  %v2560_v3 = vsel %vm358_vm6, 1.0, %v4932_v32 }
 0x211   : > { %2760 = vset.pattern.permute.xlu1 %v4911_v31  ;;  %2275 = vmatprep.mubr.f32.mxu1 %v4932_v32  ;;  %v2563_v19 = vsel %vm585_vm7, 1.0, %v4932_v32  ;;  %vm610_vm9 = vcmp.eq.s32.totalorder %v3686_v48, %v3499_v9  ;;  %v960_v11 = vadd.f32 %v2618_v5, %v704_v23  ;;  %v450_v14 = vadd.f32 %v2556_v44, %v3706_v53  ;;  %v5005_v5 = vld [vmem:[#allocation85_spill] sm:$0xff]  ;;  %v5006_v44 = vld [vmem:[#allocation108_spill] sm:$0xff] }
 0x212   : > { %v4124_v22 = vadd.f32 %v1561_v27, %v1398_v28  ;;  %1720 = vperm.xlu1 %2760, %v4127_v61   ;;  %v2579_v26 = vsel %vm601_vm8, 1.0, %v4932_v32  ;;  %v1390_v2 = vadd.f32 %v1358_v50, %v1195_v37  ;;  %v1748_v63 = vmul.f32 %v3964_v46, %v1625_v49  ;;  %v5003_v27 = vld [vmem:[#allocation63_spill] sm:$0xff] }
 0x213   : > { %v4138_v39 = vpop.permute.xlu0 %1501  ;;  %v1187_v13 = vmul.f32 %v3836_v36, %v5002_v54  ;;  %vm866_vm10 = vcmp.eq.s32.totalorder %v3686_v48, %v3507_v24  ;;  %v1382_v10 = vmul.f32 %v3952_v55, %v3781_v8  ;;  %v4191_v6 = vadd.f32 %v2560_v3, %v3706_v53 }
 0x214   : > { %2647 = vmatmul.mubr.msk.f32.gmra.mrb[2].mxu1 %vm2012_vm13, %v1991_v12  ;;  %v452_v12 = vadd.f32 %v2558_v35, %v3706_v53  ;;  %v681_v42 = vadd.f32 %v2563_v19, %v425_v43  ;;  %v2588_v16 = vsel %vm610_vm9, 1.0, %v4932_v32  ;;  %v1585_v17 = vadd.f32 %v1553_v18, %v1390_v2  ;;  %v5008_v18 = vld [vmem:[#allocation56_spill] sm:$0xff]  ;;  %v5009_v19 = vld [vmem:[#allocation87_spill] sm:$0xff] }
 0x215   : > { %v4160_v59 = vpop.permute.xlu1 %1497  ;;  %2281 = vmatprep.mubr.f32.mxu1 %v4932_v32  ;;  %v697_v28 = vadd.f32 %v2579_v26, %v441_v62  ;;  %vm841_vm11 = vcmp.eq.s32.totalorder %v3686_v48, %v5003_v27  ;;  %v1188_v24 = vmul.f32 %v3836_v36, %v3625_v41  ;;  %v1219_v49 = vadd.f32 %v1187_v13, %v960_v11  ;;  %v2789_v41 = vld [vmem:[%s3088_s4 + $0x48] sm:$0xff]  ;;  %v5010_v11 = vld [vmem:[#allocation91_spill] sm:$0xff]  ;;  %v5012_v27 = vld [vmem:[#allocation116_spill] sm:$0xff] }
 0x216   : > { %2761 = vset.pattern.permute.xlu1 %v4886_v40  ;;  %v2620_v30 = vsel %vm866_vm10, 1.0, %v4932_v32  ;;  %vm857_vm12 = vcmp.eq.s32.totalorder %v3686_v48, %v3817_v60  ;;  %v1780_v43 = vadd.f32 %v1748_v63, %v1585_v17  ;;  %v706_v56 = vadd.f32 %v2588_v16, %v450_v14  ;;  %v5007_v62 = vld [vmem:[#allocation54_spill] sm:$0xff] }
 0x217   : > { %1465 = vperm.xlu1 %2761, %v4178_v38   ;;  %v4181_v4 = vpop.permute.xlu0 %1513  ;;  %v1414_v57 = vadd.f32 %v1382_v10, %v1219_v49  ;;  %v1220_v47 = vadd.f32 %v1188_v24, %v3954_v33  ;;  %vm603_vm14 = vcmp.eq.s32.totalorder %v3686_v48, %v5004_v25  ;;  %v2595_v7 = vsel %vm841_vm11, 1.0, %v4932_v32  ;;  %v5011_v63 = vld [vmem:[#allocation130_spill] sm:$0xff] }
 0x218   : > { %vm612_vm15 = vcmp.eq.s32.totalorder %v3686_v48, %v5005_v5  ;;  %v962_v37 = vadd.f32 %v2620_v30, %v706_v56  ;;  %v1383_v33 = vmul.f32 %v3952_v55, %v5006_v44  ;;  %v2611_v0 = vsel %vm857_vm12, 1.0, %v4932_v32  ;;  %v5014_v30 = vld [vmem:[#allocation113_spill] sm:$0xff]  ;;  %v5017_v5 = vld [vmem:[#allocation15_spill] sm:$0xff]  ;;  %v5018_v44 = vld [vmem:[#allocation78_spill] sm:$0xff] }
 0x219   : > { %v1189_v35 = vmul.f32 %v3836_v36, %v5007_v62  ;;  %v1191_v3 = vmul.f32 %v3836_v36, %v5008_v18  ;;  %vm868_vm0 = vcmp.eq.s32.totalorder %v3686_v48, %v5009_v19  ;;  %v1164_v14 = vmul.f32 %v3836_v36, %v5010_v11  ;;  %v5015_v56 = vld [vmem:[#allocation105_spill] sm:$0xff]  ;;  %v5019_v19 = vld [vmem:[#allocation110_spill] sm:$0xff] }
 0x21a   : > { %v1820_v8 = vpop.permute.xlu1 %1819  ;;  %v4235_v60 = vsel %vm603_vm14, 1.0, %v4932_v32  ;;  %v1384_v54 = vmul.f32 %v3952_v55, %v5011_v63  ;;  %v1415_v13 = vadd.f32 %v1383_v33, %v1220_v47  ;;  %v937_v16 = vadd.f32 %v2595_v7, %v681_v42  ;;  %v5021_v63 = vld [vmem:[#allocation101_spill] sm:$0xff] }
 0x21b   : > { %v1943_v9 = vmul.f32 %v4005_v34, %v1820_v8  ;;  %2762 = vset.pattern.permute.xlu1 %v4916_v21  ;;  %v1526_v51 = vpop.permute.xlu0 %1525  ;;  %v2590_v17 = vsel %vm612_vm15, 1.0, %v4932_v32  ;;  %v1359_v24 = vmul.f32 %v3952_v55, %v5012_v27  ;;  %v953_v49 = vadd.f32 %v2611_v0, %v697_v28  ;;  %v5013_v8 = vld [vmem:[#allocation86_spill] sm:$0xff]  ;;  %v5016_v28 = vld [vmem:[#allocation7_spill] sm:$0xff] }
 0x21c   : > { %v1577_v52 = vmul.f32 %v4013_v45, %v1526_v51  ;;  %1851 = vperm.xlu1 %2762, %v2789_v41   ;;  %vm614_vm1 = vcmp.eq.s32.totalorder %v3686_v48, %v5013_v8  ;;  %v2622_v42 = vsel %vm868_vm0, 1.0, %v4932_v32  ;;  %v1196_v51 = vadd.f32 %v1164_v14, %v937_v16  ;;  %v5022_v16 = vld [vmem:[#allocation132_spill] sm:$0xff]  ;;  %v5023_v27 = vld [vmem:[#allocation22_spill] sm:$0xff] }
 0x21d   : > { %v1975_v50 = vadd.f32 %v1943_v9, %v1780_v43  ;;  %v1190_v43 = vmul.f32 %v3836_v36, %v5014_v30  ;;  %v1221_v9 = vadd.f32 %v1189_v35, %v962_v37  ;;  %v1554_v47 = vmul.f32 %v4013_v45, %v5016_v28  ;;  %v4269_v35 = vld [vmem:[%s3088_s4 + $0xd0] sm:$0xff] }
 0x21e   : > { %v4223_v23 = vadd.f32 %v1577_v52, %v1414_v57  ;;  %v1180_v57 = vmul.f32 %v3836_v36, %v5015_v56  ;;  %v708_v25 = vadd.f32 %v2590_v17, %v452_v12  ;;  %vm602_vm2 = vcmp.eq.s32.totalorder %v3686_v48, %v5018_v44 }
 0x21f   : > { %v1629_v26 = vpop.permute.xlu1 %1628  ;;  %2631 = vmatmul.mubr.msk.f32.gmra.mrb[2].mxu0 %vm2012_vm13, %v1975_v50  ;;  %v1530_v2 = vpop.permute.xlu0 %1529  ;;  %v1416_v7 = vadd.f32 %v1384_v54, %v1221_v9  ;;  %v1222_v50 = vadd.f32 %v1190_v43, %v5017_v5  ;;  %v1391_v33 = vadd.f32 %v1359_v24, %v1196_v51  ;;  %v2592_v12 = vsel %vm614_vm1, 1.0, %v4932_v32  ;;  %v5025_v51 = vld [vmem:[#allocation114_spill] sm:$0xff] }
 0x220   : > { %v1578_v10 = vmul.f32 %v4013_v45, %v1530_v2  ;;  %1915 = vperm.xlu1 %2762, %v4127_v61   ;;  %2185 = vmatprep.mubr.f32.mxu0 %v4932_v32  ;;  %v1212_v0 = vadd.f32 %v1180_v57, %v953_v49  ;;  %v1749_v62 = vmul.f32 %v3964_v46, %v1629_v26  ;;  %v5020_v2 = vld [vmem:[#allocation88_spill] sm:$0xff] }
 0x221   : > { %v964_v18 = vadd.f32 %v2622_v42, %v708_v25  ;;  %v1385_v11 = vmul.f32 %v3952_v55, %v5019_v19  ;;  %vm870_vm3 = vcmp.eq.s32.totalorder %v3686_v48, %v5020_v2  ;;  %v1375_v26 = vmul.f32 %v3952_v55, %v5021_v63  ;;  %v5027_v2 = vld [vmem:[#allocation112_spill] sm:$0xff] }
 0x222   : > { %v4252_v61 = vadd.f32 %v1578_v10, %v1415_v13  ;;  %v1586_v54 = vadd.f32 %v1554_v47, %v1391_v33  ;;  %v1570_v13 = vmul.f32 %v4013_v45, %v4160_v59  ;;  %v1386_v17 = vmul.f32 %v3952_v55, %v5022_v16  ;;  %v5024_v59 = vld [vmem:[#allocation81_spill] sm:$0xff]  ;;  %v4301_v47 = vld [vmem:[%s3088_s4 + $0x58] sm:$0xff] }
 0x223   : > { %v1693_v52 = vpop.permute.xlu1 %1692  ;;  %v1534_v41 = vpop.permute.xlu0 %1533  ;;  %vm859_vm4 = vcmp.eq.s32.totalorder %v3686_v48, %v5023_v27  ;;  %v1417_v24 = vadd.f32 %v1385_v11, %v1222_v50  ;;  %v1407_v30 = vadd.f32 %v1375_v26, %v1212_v0  ;;  %vm858_vm5 = vcmp.eq.s32.totalorder %v3686_v48, %v5024_v59 }
 0x224   : > { %v1579_v37 = vmul.f32 %v4013_v45, %v1534_v41  ;;  %2763 = vset.pattern.permute.xlu1 %v4911_v31  ;;  %v1781_v43 = vadd.f32 %v1749_v62, %v1586_v54  ;;  %v1765_v9 = vmul.f32 %v3964_v46, %v1693_v52  ;;  %v1192_v56 = vmul.f32 %v3836_v36, %v5025_v51  ;;  %v5032_v51 = vld [vmem:[#allocation126_spill] sm:$0xff] }
 0x225   : > { %1724 = vperm.xlu1 %2763, %v4269_v35   ;;  %v1223_v57 = vadd.f32 %v1191_v3, %v964_v18  ;;  %v710_v41 = vadd.f32 %v2592_v12, %v4191_v6  ;;  %v2624_v52 = vsel %vm870_vm3, 1.0, %v4932_v32  ;;  %v1602_v25 = vadd.f32 %v1570_v13, %v1407_v30 }
 0x226   : > { %v4278_v14 = vadd.f32 %v1579_v37, %v1416_v7  ;;  %v2613_v3 = vsel %vm859_vm4, 1.0, %v4932_v32  ;;  %v5026_v37 = vld [vmem:[#allocation16_spill] sm:$0xff]  ;;  %v699_v6 = vadd.f32 %v4235_v60, %v4152_v15  ;;  %v2580_v12 = vsel %vm602_vm2, 1.0, %v4932_v32  ;;  %v5028_v15 = vld [vmem:[#allocation58_spill] sm:$0xff] }
 0x227   : > { %v1538_v10 = vpop.permute.xlu0 %1537  ;;  %v1418_v50 = vadd.f32 %v1386_v17, %v1223_v57  ;;  %v1224_v33 = vadd.f32 %v1192_v56, %v5026_v37  ;;  %v1797_v18 = vadd.f32 %v1765_v9, %v1602_v25  ;;  %v966_v11 = vadd.f32 %v2624_v52, %v710_v41  ;;  %v5029_v17 = vld [vmem:[#allocation6_spill] sm:$0xff]  ;;  %v5033_v52 = vld [vmem:[#allocation45_spill] sm:$0xff] }
 0x228   : > { %v1580_v49 = vmul.f32 %v4013_v45, %v1538_v10  ;;  %v1824_v8 = vpop.permute.xlu1 %1823  ;;  %v1387_v63 = vmul.f32 %v3952_v55, %v5027_v2  ;;  %v1193_v60 = vmul.f32 %v3836_v36, %v5028_v15  ;;  %v2612_v44 = vsel %vm858_vm5, 1.0, %v4932_v32 }
 0x229   : > { %v1944_v42 = vmul.f32 %v4005_v34, %v1824_v8  ;;  %2764 = vset.pattern.permute.xlu1 %v4886_v40  ;;  %v955_v54 = vadd.f32 %v2613_v3, %v699_v6  ;;  %v698_v16 = vadd.f32 %v2580_v12, %v4141_v58  ;;  %v1388_v27 = vmul.f32 %v3952_v55, %v5029_v17  ;;  %v5030_v8 = vld [vmem:[#allocation95_spill] sm:$0xff]  ;;  %v5035_v3 = vld [vmem:[#allocation90_spill] sm:$0xff] }
 0x22a   : > { %v4298_v28 = vadd.f32 %v1580_v49, %v1417_v24  ;;  %1469 = vperm.xlu1 %2764, %v4301_v47   ;;  %v1419_v24 = vadd.f32 %v1387_v63, %v1224_v33  ;;  %v1168_v30 = vmul.f32 %v3836_v36, %v5030_v8  ;;  %v1225_v58 = vadd.f32 %v1193_v60, %v966_v11  ;;  %v5036_v33 = vld [vmem:[#allocation103_spill] sm:$0xff] }
 0x22b   : > { %v1976_v7 = vadd.f32 %v1944_v42, %v1781_v43  ;;  %v1542_v5 = vpop.permute.xlu0 %1541  ;;  %v5031_v43 = vld [vmem:[#allocation107_spill] sm:$0xff]  ;;  %v1181_v25 = vmul.f32 %v3836_v36, %v5033_v52  ;;  %v1363_v37 = vmul.f32 %v3952_v55, %v5035_v3  ;;  %v1571_v12 = vmul.f32 %v4013_v45, %v4138_v39  ;;  %v5044_v3 = vld [vmem:[#allocation89_spill] sm:$0xff] }
 0x22c   : > { %v1581_v0 = vmul.f32 %v4013_v45, %v1542_v5  ;;  %v1888_v62 = vpop.permute.xlu1 %1887  ;;  %v1182_v9 = vmul.f32 %v3836_v36, %v5031_v43  ;;  %v1200_v56 = vadd.f32 %v1168_v30, %v5032_v51  ;;  %v1420_v5 = vadd.f32 %v1388_v27, %v1225_v58  ;;  %v5038_v11 = vld [vmem:[#allocation115_spill] sm:$0xff] }
 0x22d   : > { %v1960_v19 = vmul.f32 %v4005_v34, %v1888_v62  ;;  %2632 = vmatmul.mubr.msk.f32.gmra.mrb[4].mxu0 %vm2012_vm13, %v1976_v7  ;;  %v5037_v62 = vld [vmem:[#allocation51_spill] sm:$0xff]  ;;  %v1767_v2 = vmul.f32 %v3964_v46, %v5038_v11 }
 0x22e   : > { %v4325_v26 = vadd.f32 %v1581_v0, %v1418_v50  ;;  %2765 = vset.pattern.permute.xlu1 %v4916_v21  ;;  %2191 = vmatprep.mubr.f32.mxu0 %v4932_v32  ;;  %v1214_v57 = vadd.f32 %v1182_v9, %v955_v54  ;;  %v1377_v0 = vmul.f32 %v3952_v55, %v5036_v33  ;;  %v5040_v17 = vld [vmem:[#allocation119_spill] sm:$0xff]  ;;  %v5045_v33 = vld [vmem:[#allocation10_spill] sm:$0xff] }
 0x22f   : > { %v1992_v13 = vadd.f32 %v1960_v19, %v1797_v18  ;;  %1855 = vperm.xlu1 %2765, %v4178_v38   ;;  %v1546_v10 = vpop.permute.xlu0 %1545  ;;  %v954_v38 = vadd.f32 %v2612_v44, %v698_v16  ;;  %v1395_v63 = vadd.f32 %v1363_v37, %v1200_v56  ;;  %v5039_v44 = vld [vmem:[#allocation118_spill] sm:$0xff]  ;;  %v2792_v16 = vld [vmem:[%s3088_s4 + $0xd8] sm:$0xff]  ;;  %v1948_v27 = vmul.f32 %v4005_v34, %v5040_v17  ;;  %v5048_v11 = vld [vmem:[#allocation67_spill] sm:$0xff] }
 0x230   : > { %v1582_v49 = vmul.f32 %v4013_v45, %v1546_v10  ;;  %v1409_v15 = vadd.f32 %v1377_v0, %v1214_v57  ;;  %v1962_v54 = vmul.f32 %v4005_v34, %v5039_v44  ;;  %v2793_v57 = vld [vmem:[%s3088_s4 + $0x60] sm:$0xff]  ;;  %v1361_v37 = vmul.f32 %v3952_v55, %v5044_v3  ;;  %v5049_v44 = vld [vmem:[#allocation80_spill] sm:$0xff] }
 0x231   : > { %v1697_v42 = vpop.permute.xlu1 %1696  ;;  %2633 = vmatmul.mubr.msk.f32.gmra.mrb[6].mxu0 %vm2012_vm13, %v4072_v1  ;;  %2648 = vmatmul.mubr.msk.f32.gmra.mrb[4].mxu1 %vm2012_vm13, %v1992_v13  ;;  %v5034_v1 = vld [vmem:[#allocation125_spill] sm:$0xff]  ;;  %v1213_v6 = vadd.f32 %v1181_v25, %v954_v38  ;;  %v1556_v0 = vmul.f32 %v4013_v45, %v5045_v33  ;;  %vm844_vm9 = vcmp.eq.s32.totalorder %v3686_v48, %v5048_v11  ;;  %v5054_v33 = vld [vmem:[#allocation127_spill] sm:$0xff] }
 0x232   : > { %v4347_v59 = vadd.f32 %v1582_v49, %v1419_v24  ;;  %2287 = vmatprep.mubr.f32.mxu1 %v4932_v32  ;;  %2197 = vmatprep.mubr.f32.mxu0 %v4932_v32  ;;  %v1376_v7 = vmul.f32 %v3952_v55, %v5034_v1  ;;  %v1766_v10 = vmul.f32 %v3964_v46, %v1697_v42  ;;  %v5041_v25 = vld [vmem:[#allocation93_spill] sm:$0xff] }
 0x233   : > { %1919 = vperm.xlu1 %2765, %v4269_v35   ;;  %v1550_v41 = vpop.permute.xlu0 %1549  ;;  %v1558_v35 = vmul.f32 %v4013_v45, %v5037_v62  ;;  %v1166_v1 = vmul.f32 %v3836_v36, %v5041_v25  ;;  %vm604_vm10 = vcmp.eq.s32.totalorder %v3686_v48, %v5049_v44  ;;  %v5057_v44 = vld [vmem:[#allocation84_spill] sm:$0xff] }
 0x234   : > { %v1583_v50 = vmul.f32 %v4013_v45, %v1550_v41  ;;  %v1408_v13 = vadd.f32 %v1376_v7, %v1213_v6  ;;  %v5042_v7 = vld [vmem:[#allocation124_spill] sm:$0xff]  ;;  %vm862_vm15 = vcmp.eq.s32.totalorder %v3686_v48, %v5057_v44 }
 0x235   : > { %v1590_v24 = vadd.f32 %v1558_v35, %v1395_v63  ;;  %v5046_v35 = vld [vmem:[#allocation64_spill] sm:$0xff] }
 0x236   : > { %v4366_v18 = vadd.f32 %v1583_v50, %v1420_v5  ;;  %v1506_v19 = vpop.permute.xlu1 %1505  ;;  %v1603_v30 = vadd.f32 %v1571_v12, %v1408_v13  ;;  %v1198_v5 = vadd.f32 %v1166_v1, %v5042_v7  ;;  %v5043_v50 = vld [vmem:[#allocation9_spill] sm:$0xff]  ;;  %vm588_vm7 = vcmp.eq.s32.totalorder %v3686_v48, %v5046_v35 }
 0x237   : > { %v1572_v60 = vmul.f32 %v4013_v45, %v1506_v19  ;;  %2766 = vset.pattern.permute.xlu1 %v4911_v31  ;;  %vm332_vm6 = vcmp.eq.s32.totalorder %v3686_v48, %v5043_v50  ;;  %v5047_v19 = vld [vmem:[#allocation19_spill] sm:$0xff]  ;;  %v2566_v63 = vsel %vm588_vm7, 1.0, %v4932_v32  ;;  %v1557_v7 = vmul.f32 %v4013_v45, %v4052_v29 }
 0x238   : > { %1728 = vperm.xlu1 %2766, %v2792_v16   ;;  %v1645_v39 = vpop.permute.xlu0 %1644  ;;  %v1798_v58 = vadd.f32 %v1766_v10, %v1603_v30  ;;  %v2534_v12 = vsel %vm332_vm6, 1.0, %v4932_v32  ;;  %vm348_vm8 = vcmp.eq.s32.totalorder %v3686_v48, %v5047_v19  ;;  %v2794_v10 = vld [vmem:[%s3088_s4 + $0xe0] sm:$0xff]  ;;  %v5051_v30 = vld [vmem:[#allocation35_spill] sm:$0xff]  ;;  %v5056_v19 = vld [vmem:[#allocation82_spill] sm:$0xff] }
 0x239   : > { %v1604_v49 = vadd.f32 %v1572_v60, %v1409_v15  ;;  %v1753_v8 = vmul.f32 %v3964_v46, %v1645_v39  ;;  %v428_v60 = vadd.f32 %v2534_v12, %v3706_v53  ;;  %v2598_v39 = vsel %vm844_vm9, 1.0, %v4932_v32  ;;  %v5053_v50 = vld [vmem:[#allocation47_spill] sm:$0xff] }
 0x23a   : > { %v1183_v3 = vmul.f32 %v3836_v36, %v5053_v50  ;;  %vm606_vm14 = vcmp.eq.s32.totalorder %v3686_v48, %v5056_v19 }
 0x23b   : > { %v1799_v43 = vadd.f32 %v1767_v2, %v1604_v49  ;;  %v1785_v9 = vadd.f32 %v1753_v8, %v1590_v24  ;;  %v1892_v38 = vpop.permute.xlu1 %1891  ;;  %v684_v17 = vadd.f32 %v2566_v63, %v428_v60  ;;  %v2582_v49 = vsel %vm604_vm10, 1.0, %v4932_v32 }
 0x23c   : > { %v1961_v51 = vmul.f32 %v4005_v34, %v1892_v38  ;;  %2767 = vset.pattern.permute.xlu1 %v4886_v40 }
 0x23d   : > { %v1994_v42 = vadd.f32 %v1962_v54, %v1799_v43  ;;  %v4381_v56 = vadd.f32 %v1948_v27, %v1785_v9  ;;  %1473 = vperm.xlu1 %2767, %v2793_v57   ;;  %v5050_v27 = vld [vmem:[#allocation83_spill] sm:$0xff]  ;;  %v1167_v43 = vmul.f32 %v3836_v36, %v5051_v30  ;;  %v940_v9 = vadd.f32 %v2598_v39, %v684_v17 }
 0x23e   : > { %v1993_v41 = vadd.f32 %v1961_v51, %v1798_v58  ;;  %vm860_vm11 = vcmp.eq.s32.totalorder %v3686_v48, %v5050_v27  ;;  %v4426_v51 = vld [vmem:[%s3088_s4 + $0x68] sm:$0xff] }
 0x23f   : > { %v2614_v58 = vsel %vm860_vm11, 1.0, %v4932_v32  ;;  %v1199_v1 = vadd.f32 %v1167_v43, %v940_v9  ;;  %v5058_v9 = vld [vmem:[#allocation109_spill] sm:$0xff] }
 0x240   : > { %v1637_v52 = vpop.permute.xlu1 %1636  ;;  %2649 = vmatmul.mubr.msk.f32.gmra.mrb[6].mxu1 %vm2012_vm13, %v1993_v41  ;;  %v5052_v41 = vld [vmem:[#allocation117_spill] sm:$0xff] }
 0x241   : > { %2768 = vset.pattern.permute.xlu1 %v4916_v21  ;;  %2293 = vmatprep.mubr.f32.mxu1 %v4932_v32  ;;  %v1751_v6 = vmul.f32 %v3964_v46, %v1637_v52  ;;  %v1362_v52 = vmul.f32 %v3952_v55, %v5052_v41  ;;  %v5060_v41 = vld [vmem:[#allocation129_spill] sm:$0xff] }
 0x242   : > { %1859 = vperm.xlu1 %2768, %v4301_v47   ;;  %v1393_v47 = vadd.f32 %v1361_v37, %v1198_v5 }
 0x243   : > { %v1394_v37 = vadd.f32 %v1362_v52, %v1199_v1  ;;  %v1380_v52 = vmul.f32 %v3952_v55, %v5060_v41 }
 0x244   : > { %2650 = vmatmul.mubr.msk.f32.gmra.mrb[8].mxu1 %vm2012_vm13, %v1994_v42  ;;  %v1588_v2 = vadd.f32 %v1556_v0, %v1393_v47  ;;  %v1378_v0 = vmul.f32 %v3952_v55, %v5054_v33  ;;  %v5055_v47 = vld [vmem:[#allocation21_spill] sm:$0xff] }
 0x245   : > { %v1510_v62 = vpop.permute.xlu1 %1509  ;;  %2299 = vmatprep.mubr.f32.mxu1 %v4932_v32  ;;  %vm350_vm12 = vcmp.eq.s32.totalorder %v3686_v48, %v5055_v47  ;;  %v1589_v12 = vadd.f32 %v1557_v7, %v1394_v37  ;;  %v1713_v37 = vpop.permute.xlu0 %1712 }
 0x246   : > { %1923 = vperm.xlu1 %2768, %v2792_v16   ;;  %v1783_v54 = vadd.f32 %v1751_v6, %v1588_v2  ;;  %v2550_v16 = vsel %vm348_vm8, 1.0, %v4932_v32  ;;  %v1573_v29 = vmul.f32 %v4013_v45, %v1510_v62  ;;  %v2584_v62 = vsel %vm606_vm14, 1.0, %v4932_v32 }
 0x247   : > { %v444_v8 = vadd.f32 %v2550_v16, %v3706_v53 }
 0x249   : > { %v700_v42 = vadd.f32 %v2582_v49, %v444_v8 }
 0x24a   : > { %2769 = vset.pattern.permute.xlu1 %v4911_v31  ;;  %v1832_v15 = vpop.permute.xlu1 %1831 }
 0x24b   : > { %v1946_v13 = vmul.f32 %v4005_v34, %v1832_v15  ;;  %1732 = vperm.xlu1 %2769, %v2794_v10   ;;  %v956_v25 = vadd.f32 %v2614_v58, %v700_v42  ;;  %v5059_v58 = vld [vmem:[#allocation50_spill] sm:$0xff] }
 0x24c   : > { %v1185_v42 = vmul.f32 %v3836_v36, %v5059_v58  ;;  %v5068_v58 = vld [vmem:[#allocation11_spill] sm:$0xff] }
 0x24d   : > { %v1978_v24 = vadd.f32 %v1946_v13, %v1783_v54  ;;  %v1215_v6 = vadd.f32 %v1183_v3, %v956_v25  ;;  %v2797_v25 = vld [vmem:[%s3088_s4 + $0x70] sm:$0xff]  ;;  %v1574_v3 = vmul.f32 %v4013_v45, %v4181_v4 }
 0x24f   : > { %2770 = vset.pattern.permute.xlu1 %v4886_v40  ;;  %v1641_v38 = vpop.permute.xlu1 %1640  ;;  %2634 = vmatmul.mubr.msk.f32.gmra.mrb[8].mxu0 %vm2012_vm13, %v1978_v24  ;;  %v1410_v2 = vadd.f32 %v1378_v0, %v1215_v6  ;;  %v2796_v24 = vld [vmem:[%s3088_s4 + $0xe8] sm:$0xff] }
 0x250   : > { %1477 = vperm.xlu1 %2770, %v4426_v51   ;;  %2203 = vmatprep.mubr.f32.mxu0 %v4932_v32  ;;  %v1752_v35 = vmul.f32 %v3964_v46, %v1641_v38  ;;  %v1184_v38 = vmul.f32 %v3836_v36, %v5058_v9 }
 0x251   : > { %v1605_v54 = vadd.f32 %v1573_v29, %v1410_v2 }
 0x252   : > { %v1784_v63 = vadd.f32 %v1752_v35, %v1589_v12  ;;  %v1770_v35 = vmul.f32 %v3964_v46, %v1713_v37 }
 0x253   : > { %v1705_v5 = vpop.permute.xlu1 %1704 }
 0x254   : > { %2771 = vset.pattern.permute.xlu1 %v4916_v21  ;;  %v1768_v15 = vmul.f32 %v3964_v46, %v1705_v5  ;;  %v5062_v5 = vld [vmem:[#allocation104_spill] sm:$0xff] }
 0x255   : > { %1863 = vperm.xlu1 %2771, %v2793_v57   ;;  %v2552_v57 = vsel %vm350_vm12, 1.0, %v4932_v32  ;;  %v1379_v50 = vmul.f32 %v3952_v55, %v5062_v5  ;;  %v5070_v5 = vld [vmem:[#allocation106_spill] sm:$0xff] }
 0x256   : > { %v446_v39 = vadd.f32 %v2552_v57, %v3706_v53  ;;  %v1800_v17 = vadd.f32 %v1768_v15, %v1605_v54 }
 0x258   : > { %v1836_v11 = vpop.permute.xlu1 %1835  ;;  %v702_v49 = vadd.f32 %v2584_v62, %v446_v39  ;;  %v2799_v62 = vld [vmem:[%s3088_s4 + $0x78] sm:$0xff] }
 0x259   : > { %v1947_v60 = vmul.f32 %v4005_v34, %v1836_v11  ;;  %1927 = vperm.xlu1 %2771, %v2794_v10   ;;  %v2616_v10 = vsel %vm862_vm15, 1.0, %v4932_v32  ;;  %v5063_v11 = vld [vmem:[#allocation121_spill] sm:$0xff] }
 0x25a   : > { %v958_v30 = vadd.f32 %v2616_v10, %v702_v49  ;;  %v1965_v4 = vmul.f32 %v4005_v34, %v5063_v11 }
 0x25b   : > { %v1979_v13 = vadd.f32 %v1947_v60, %v1784_v63 }
 0x25c   : > { %v1900_v16 = vpop.permute.xlu1 %1899  ;;  %v1217_v7 = vadd.f32 %v1185_v42, %v958_v30  ;;  %v1560_v42 = vmul.f32 %v4013_v45, %v5068_v58  ;;  %v5075_v58 = vld [vmem:[#allocation70_spill] sm:$0xff] }
 0x25d   : > { %v1963_v27 = vmul.f32 %v4005_v34, %v1900_v16  ;;  %2772 = vset.pattern.permute.xlu1 %v4911_v31  ;;  %2635 = vmatmul.mubr.msk.f32.gmra.mrb[10].mxu0 %vm2012_vm13, %v1979_v13  ;;  %vm594_vm1 = vcmp.eq.s32.totalorder %v3686_v48, %v5075_v58  ;;  %v5083_v58 = vld [vmem:[#allocation72_spill] sm:$0xff] }
 0x25e   : > { %1736 = vperm.xlu1 %2772, %v2796_v24   ;;  %2209 = vmatprep.mubr.f32.mxu0 %v4932_v32  ;;  %v1412_v0 = vadd.f32 %v1380_v52, %v1217_v7  ;;  %v2800_v52 = vld [vmem:[%s3088_s4 + $0xf8] sm:$0xff]  ;;  %vm596_vm4 = vcmp.eq.s32.totalorder %v3686_v48, %v5083_v58 }
 0x25f   : > { %v1995_v8 = vadd.f32 %v1963_v27, %v1800_v17 }
 0x261   : > { %v1709_v43 = vpop.permute.xlu1 %1708  ;;  %2636 = vmatmul.mubr.msk.f32.gmra.mrb[12].mxu0 %vm2012_vm13, %v4381_v56  ;;  %2651 = vmatmul.mubr.msk.f32.gmra.mrb[10].mxu1 %vm2012_vm13, %v1995_v8  ;;  %v5061_v56 = vld [vmem:[#allocation8_spill] sm:$0xff] }
 0x262   : > { %2773 = vset.pattern.permute.xlu1 %v4886_v40  ;;  %2305 = vmatprep.mubr.f32.mxu1 %v4932_v32  ;;  %v1216_v1 = vadd.f32 %v1184_v38, %v5061_v56  ;;  %v1769_v12 = vmul.f32 %v3964_v46, %v1709_v43  ;;  %v5065_v8 = vld [vmem:[#allocation128_spill] sm:$0xff]  ;;  %v5067_v38 = vld [vmem:[#allocation111_spill] sm:$0xff] }
 0x263   : > { %1481 = vperm.xlu1 %2773, %v2797_v25   ;;  %2215 = vmatprep.mubr.f32.mxu0 %v4932_v32  ;;  %v5066_v43 = vld [vmem:[#allocation92_spill] sm:$0xff] }
 0x264   : > { %v1411_v6 = vadd.f32 %v1379_v50, %v1216_v1  ;;  %v1365_v9 = vmul.f32 %v3952_v55, %v5066_v43  ;;  %v1381_v50 = vmul.f32 %v3952_v55, %v5070_v5 }
 0x266   : > { %v1518_v33 = vpop.permute.xlu1 %1517  ;;  %v1606_v19 = vadd.f32 %v1574_v3, %v1411_v6 }
 0x267   : > { %v1575_v47 = vmul.f32 %v4013_v45, %v1518_v33  ;;  %2774 = vset.pattern.permute.xlu1 %v4916_v21 }
 0x268   : > { %1867 = vperm.xlu1 %2774, %v4426_v51   ;;  %v1801_v15 = vadd.f32 %v1769_v12, %v1606_v19  ;;  %v2798_v51 = vld [vmem:[%s3088_s4 + $0xf0] sm:$0xff] }
 0x269   : > { %v1607_v29 = vadd.f32 %v1575_v47, %v1412_v0 }
 0x26b   : > { %v1802_v2 = vadd.f32 %v1770_v35, %v1607_v29  ;;  %v1904_v63 = vpop.permute.xlu1 %1903 }
 0x26c   : > { %v1964_v60 = vmul.f32 %v4005_v34, %v1904_v63  ;;  %1931 = vperm.xlu1 %2774, %v2796_v24   ;;  %v5064_v24 = vld [vmem:[#allocation97_spill] sm:$0xff] }
 0x26d   : > { %v1997_v57 = vadd.f32 %v1965_v4, %v1802_v2  ;;  %v1657_v2 = vpop.permute.xlu0 %1656 }
 0x26e   : > { %v1996_v44 = vadd.f32 %v1964_v60, %v1801_v15  ;;  %v1756_v15 = vmul.f32 %v3964_v46, %v1657_v2 }
 0x270   : > { %2775 = vset.pattern.permute.xlu1 %v4911_v31  ;;  %v1649_v54 = vpop.permute.xlu1 %1648  ;;  %2652 = vmatmul.mubr.msk.f32.gmra.mrb[12].mxu1 %vm2012_vm13, %v1996_v44 }
 0x271   : > { %1740 = vperm.xlu1 %2775, %v2798_v51   ;;  %2311 = vmatprep.mubr.f32.mxu1 %v4932_v32  ;;  %v1754_v16 = vmul.f32 %v3964_v46, %v1649_v54 }
 0x273   : > { %v1786_v17 = vadd.f32 %v1754_v16, %v4089_v20  ;;  %v1186_v20 = vmul.f32 %v3836_v36, %v5067_v38 }
 0x274   : > { %2653 = vmatmul.mubr.msk.f32.gmra.mrb[14].mxu1 %vm2012_vm13, %v1997_v57  ;;  %v1788_v57 = vadd.f32 %v1756_v15, %v4124_v22  ;;  %v5072_v22 = vld [vmem:[#allocation39_spill] sm:$0xff] }
 0x275   : > { %2776 = vset.pattern.permute.xlu1 %v4886_v40  ;;  %v1522_v13 = vpop.permute.xlu1 %1521  ;;  %2317 = vmatprep.mubr.f32.mxu1 %v4932_v32  ;;  %v1170_v40 = vmul.f32 %v3836_v36, %v5064_v24 }
 0x276   : > { %1485 = vperm.xlu1 %2776, %v2799_v62   ;;  %v1576_v37 = vmul.f32 %v4013_v45, %v1522_v13 }
 0x277   : > { %v1202_v30 = vadd.f32 %v1170_v40, %v5065_v8  ;;  %v5073_v40 = vld [vmem:[#allocation94_spill] sm:$0xff]  ;;  %v1661_v8 = vpop.permute.xlu0 %1660 }
 0x278   : > { %v1757_v38 = vmul.f32 %v3964_v46, %v1661_v8 }
 0x279   : > { %v1397_v1 = vadd.f32 %v1365_v9, %v1202_v30 }
 0x27a   : > { %2778 = vset.pattern.permute.xlu1 %v4916_v21  ;;  %v1844_v39 = vpop.permute.xlu1 %1843 }
 0x27b   : > { %v1949_v27 = vmul.f32 %v4005_v34, %v1844_v39  ;;  %1871 = vperm.xlu1 %2778, %v2797_v25   ;;  %v5069_v25 = vld [vmem:[#allocation24_spill] sm:$0xff]  ;;  %v1592_v3 = vadd.f32 %v1560_v42, %v1397_v1  ;;  %v5076_v1 = vld [vmem:[#allocation73_spill] sm:$0xff] }
 0x27c   : > { %v1218_v56 = vadd.f32 %v1186_v20, %v5069_v25  ;;  %v5074_v20 = vld [vmem:[#allocation12_spill] sm:$0xff]  ;;  %vm850_vm2 = vcmp.eq.s32.totalorder %v3686_v48, %v5076_v1  ;;  %v5084_v1 = vld [vmem:[#allocation75_spill] sm:$0xff] }
 0x27d   : > { %v1981_v10 = vadd.f32 %v1949_v27, %v1786_v17  ;;  %v5071_v17 = vld [vmem:[#allocation99_spill] sm:$0xff]  ;;  %vm338_vm0 = vcmp.eq.s32.totalorder %v3686_v48, %v5074_v20  ;;  %v5082_v20 = vld [vmem:[#allocation13_spill] sm:$0xff]  ;;  %vm852_vm5 = vcmp.eq.s32.totalorder %v3686_v48, %v5084_v1 }
 0x27e   : > { %v1413_v0 = vadd.f32 %v1381_v50, %v1218_v56  ;;  %v1172_v27 = vmul.f32 %v3836_v36, %v5071_v17  ;;  %vm340_vm3 = vcmp.eq.s32.totalorder %v3686_v48, %v5082_v20 }
 0x27f   : > { %1935 = vperm.xlu1 %2778, %v2798_v51   ;;  %v1653_v49 = vpop.permute.xlu1 %1652  ;;  %2637 = vmatmul.mubr.msk.f32.gmra.mrb[14].mxu0 %vm2012_vm13, %v1981_v10 }
 0x280   : > { %2221 = vmatprep.mubr.f32.mxu0 %v4932_v32  ;;  %v1755_v7 = vmul.f32 %v3964_v46, %v1653_v49  ;;  %v1608_v6 = vadd.f32 %v1576_v37, %v1413_v0  ;;  %v1204_v24 = vadd.f32 %v1172_v27, %v5072_v22  ;;  %v2604_v37 = vsel %vm850_vm2, 1.0, %v4932_v32  ;;  %v5079_v27 = vld [vmem:[#allocation100_spill] sm:$0xff] }
 0x282   : > { %v1787_v35 = vadd.f32 %v1755_v7, %v1592_v3  ;;  %v2572_v7 = vsel %vm594_vm1, 1.0, %v4932_v32 }
 0x283   : > { %2779 = vset.pattern.permute.xlu1 %v4911_v31  ;;  %v1717_v41 = vpop.permute.xlu1 %1716 }
 0x284   : > { %1744 = vperm.xlu1 %2779, %v2800_v52   ;;  %v1771_v31 = vmul.f32 %v3964_v46, %v1717_v41  ;;  %v2540_v41 = vsel %vm338_vm0, 1.0, %v4932_v32 }
 0x285   : > { %v434_v50 = vadd.f32 %v2540_v41, %v3706_v53  ;;  %v2542_v41 = vsel %vm340_vm3, 1.0, %v4932_v32 }
 0x286   : > { %v1803_v19 = vadd.f32 %v1771_v31, %v1608_v6 }
 0x288   : > { %2780 = vset.pattern.permute.xlu1 %v4916_v21  ;;  %v1848_v33 = vpop.permute.xlu1 %1847 }
 0x289   : > { %v1950_v47 = vmul.f32 %v4005_v34, %v1848_v33  ;;  %1875 = vperm.xlu1 %2780, %v2799_v62  }
 0x28b   : > { %v1982_v12 = vadd.f32 %v1950_v47, %v1787_v35  ;;  %v690_v35 = vadd.f32 %v2572_v7, %v434_v50  ;;  %v5077_v47 = vld [vmem:[#allocation38_spill] sm:$0xff]  ;;  %v2574_v7 = vsel %vm596_vm4, 1.0, %v4932_v32  ;;  %v436_v50 = vadd.f32 %v2542_v41, %v3706_v53 }
 0x28c   : > { %v1912_v29 = vpop.permute.xlu1 %1911  ;;  %v1173_v6 = vmul.f32 %v3836_v36, %v5077_v47 }
 0x28d   : > { %v1966_v11 = vmul.f32 %v4005_v34, %v1912_v29  ;;  %2638 = vmatmul.mubr.msk.f32.gmra.mrb[16].mxu0 %vm2012_vm13, %v1982_v12  ;;  %v946_v12 = vadd.f32 %v2604_v37, %v690_v35  ;;  %v2606_v37 = vsel %vm852_vm5, 1.0, %v4932_v32  ;;  %v692_v35 = vadd.f32 %v2574_v7, %v436_v50 }
 0x28e   : > { %2227 = vmatprep.mubr.f32.mxu0 %v4932_v32 }
 0x28f   : > { %v1998_v4 = vadd.f32 %v1966_v11, %v1803_v19  ;;  %v5078_v19 = vld [vmem:[#allocation120_spill] sm:$0xff] }
 0x290   : > { %v1368_v11 = vmul.f32 %v3952_v55, %v5078_v19 }
 0x291   : > { %v1721_v21 = vpop.permute.xlu1 %1720  ;;  %2654 = vmatmul.mubr.msk.f32.gmra.mrb[16].mxu1 %vm2012_vm13, %v1998_v4 }
 0x292   : > { %2323 = vmatprep.mubr.f32.mxu1 %v4932_v32  ;;  %v1772_v44 = vmul.f32 %v3964_v46, %v1721_v21  ;;  %v1665_v21 = vpop.permute.xlu0 %1664 }
 0x294   : > { %v1804_v62 = vadd.f32 %v1772_v44, %v4223_v23  ;;  %v1367_v23 = vmul.f32 %v3952_v55, %v5073_v40 }
 0x296   : > { %v1466_v63 = vpop.permute.xlu1 %1465  ;;  %v1399_v30 = vadd.f32 %v1367_v23, %v1204_v24  ;;  %v5080_v24 = vld [vmem:[#allocation42_spill] sm:$0xff]  ;;  %v5081_v23 = vld [vmem:[#allocation96_spill] sm:$0xff]  ;;  %v1669_v8 = vpop.permute.xlu0 %1668 }
 0x297   : > { %v1562_v49 = vmul.f32 %v4013_v45, %v1466_v63 }
 0x299   : > { %v1594_v9 = vadd.f32 %v1562_v49, %v1399_v30 }
 0x29b   : > { %v1852_v60 = vpop.permute.xlu1 %1851  ;;  %v1789_v52 = vadd.f32 %v1757_v38, %v1594_v9  ;;  %v1759_v38 = vmul.f32 %v3964_v46, %v1669_v8  ;;  %v5088_v8 = vld [vmem:[#allocation131_spill] sm:$0xff] }
 0x29c   : > { %v1951_v54 = vmul.f32 %v4005_v34, %v1852_v60  ;;  %v1758_v60 = vmul.f32 %v3964_v46, %v1665_v21 }
 0x29e   : > { %v1983_v51 = vadd.f32 %v1951_v54, %v1788_v57 }
 0x29f   : > { %v1916_v13 = vpop.permute.xlu1 %1915 }
 0x2a0   : > { %v1967_v16 = vmul.f32 %v4005_v34, %v1916_v13  ;;  %2639 = vmatmul.mubr.msk.f32.gmra.mrb[18].mxu0 %vm2012_vm13, %v1983_v51 }
 0x2a1   : > { %2233 = vmatprep.mubr.f32.mxu0 %v4932_v32 }
 0x2a2   : > { %v1999_v39 = vadd.f32 %v1967_v16, %v1804_v62 }
 0x2a4   : > { %v1725_v10 = vpop.permute.xlu1 %1724  ;;  %2655 = vmatmul.mubr.msk.f32.gmra.mrb[18].mxu1 %vm2012_vm13, %v1999_v39 }
 0x2a5   : > { %2329 = vmatprep.mubr.f32.mxu1 %v4932_v32  ;;  %v1773_v25 = vmul.f32 %v3964_v46, %v1725_v10  ;;  %v1174_v10 = vmul.f32 %v3836_v36, %v5079_v27 }
 0x2a7   : > { %v1805_v33 = vadd.f32 %v1773_v25, %v4252_v61  ;;  %v1205_v61 = vadd.f32 %v1173_v6, %v946_v12  ;;  %v1206_v40 = vadd.f32 %v1174_v10, %v5080_v24  ;;  %v5085_v6 = vld [vmem:[#allocation40_spill] sm:$0xff] }
 0x2a8   : > { %v1175_v12 = vmul.f32 %v3836_v36, %v5085_v6  ;;  %v5093_v6 = vld [vmem:[#allocation41_spill] sm:$0xff] }
 0x2a9   : > { %v1470_v43 = vpop.permute.xlu1 %1469  ;;  %v1400_v2 = vadd.f32 %v1368_v11, %v1205_v61  ;;  %v5086_v11 = vld [vmem:[#allocation122_spill] sm:$0xff] }
 0x2aa   : > { %v1563_v4 = vmul.f32 %v4013_v45, %v1470_v43  ;;  %v1370_v61 = vmul.f32 %v3952_v55, %v5086_v11 }
 0x2ac   : > { %v1595_v15 = vadd.f32 %v1563_v4, %v1400_v2  ;;  %v1673_v2 = vpop.permute.xlu0 %1672 }
 0x2ae   : > { %v1856_v42 = vpop.permute.xlu1 %1855  ;;  %v1790_v44 = vadd.f32 %v1758_v60, %v1595_v15 }
 0x2af   : > { %v1952_v56 = vmul.f32 %v4005_v34, %v1856_v42 }
 0x2b0   : > { %v1677_v1 = vpop.permute.xlu0 %1676 }
 0x2b1   : > { %v1984_v5 = vadd.f32 %v1952_v56, %v1789_v52 }
 0x2b2   : > { %v1920_v3 = vpop.permute.xlu1 %1919 }
 0x2b3   : > { %v1968_v0 = vmul.f32 %v4005_v34, %v1920_v3  ;;  %2640 = vmatmul.mubr.msk.f32.gmra.mrb[20].mxu0 %vm2012_vm13, %v1984_v5 }
 0x2b4   : > { %2239 = vmatprep.mubr.f32.mxu0 %v4932_v32 }
 0x2b5   : > { %v2000_v31 = vadd.f32 %v1968_v0, %v1805_v33 }
 0x2b7   : > { %v1729_v29 = vpop.permute.xlu1 %1728  ;;  %2656 = vmatmul.mubr.msk.f32.gmra.mrb[20].mxu1 %vm2012_vm13, %v2000_v31 }
 0x2b8   : > { %2335 = vmatprep.mubr.f32.mxu1 %v4932_v32  ;;  %v1774_v54 = vmul.f32 %v3964_v46, %v1729_v29  ;;  %v948_v29 = vadd.f32 %v2606_v37, %v692_v35 }
 0x2ba   : > { %v1806_v16 = vadd.f32 %v1774_v54, %v4278_v14  ;;  %v1369_v14 = vmul.f32 %v3952_v55, %v5081_v23  ;;  %v1207_v4 = vadd.f32 %v1175_v12, %v948_v29  ;;  %v5087_v23 = vld [vmem:[#allocation102_spill] sm:$0xff]  ;;  %v1681_v29 = vpop.permute.xlu0 %1680 }
 0x2bc   : > { %v1474_v63 = vpop.permute.xlu1 %1473  ;;  %v1401_v30 = vadd.f32 %v1369_v14, %v1206_v40  ;;  %v1176_v14 = vmul.f32 %v3836_v36, %v5087_v23 }
 0x2bd   : > { %v1564_v49 = vmul.f32 %v4013_v45, %v1474_v63  ;;  %v1402_v63 = vadd.f32 %v1370_v61, %v1207_v4 }
 0x2bf   : > { %v1596_v9 = vadd.f32 %v1564_v49, %v1401_v30  ;;  %v1208_v30 = vadd.f32 %v1176_v14, %v5088_v8 }
 0x2c1   : > { %v1860_v57 = vpop.permute.xlu1 %1859  ;;  %v1791_v52 = vadd.f32 %v1759_v38, %v1596_v9  ;;  %v5090_v9 = vld [vmem:[#allocation98_spill] sm:$0xff] }
 0x2c2   : > { %v1953_v51 = vmul.f32 %v4005_v34, %v1860_v57  ;;  %v1371_v38 = vmul.f32 %v3952_v55, %v5090_v9 }
 0x2c4   : > { %v1985_v13 = vadd.f32 %v1953_v51, %v1790_v44  ;;  %v1760_v44 = vmul.f32 %v3964_v46, %v1673_v2  ;;  %v1403_v41 = vadd.f32 %v1371_v38, %v1208_v30 }
 0x2c5   : > { %v1924_v62 = vpop.permute.xlu1 %1923 }
 0x2c6   : > { %v1969_v39 = vmul.f32 %v4005_v34, %v1924_v62  ;;  %2641 = vmatmul.mubr.msk.f32.gmra.mrb[22].mxu0 %vm2012_vm13, %v1985_v13 }
 0x2c7   : > { %2245 = vmatprep.mubr.f32.mxu0 %v4932_v32 }
 0x2c8   : > { %v2001_v17 = vadd.f32 %v1969_v39, %v1806_v16 }
 0x2ca   : > { %v1733_v22 = vpop.permute.xlu1 %1732  ;;  %2657 = vmatmul.mubr.msk.f32.gmra.mrb[22].mxu1 %vm2012_vm13, %v2001_v17 }
 0x2cb   : > { %2341 = vmatprep.mubr.f32.mxu1 %v4932_v32  ;;  %v1775_v25 = vmul.f32 %v3964_v46, %v1733_v22 }
 0x2cd   : > { %v1807_v33 = vadd.f32 %v1775_v25, %v4298_v28 }
 0x2cf   : > { %v1478_v43 = vpop.permute.xlu1 %1477 }
 0x2d0   : > { %v1565_v21 = vmul.f32 %v4013_v45, %v1478_v43 }
 0x2d2   : > { %v1597_v57 = vadd.f32 %v1565_v21, %v1402_v63 }
 0x2d4   : > { %v1864_v42 = vpop.permute.xlu1 %1863  ;;  %v1792_v62 = vadd.f32 %v1760_v44, %v1597_v57 }
 0x2d5   : > { %v1954_v56 = vmul.f32 %v4005_v34, %v1864_v42  ;;  %v5091_v42 = vld [vmem:[#allocation74_spill] sm:$0xff] }
 0x2d6   : > { %vm598_vm7 = vcmp.eq.s32.totalorder %v3686_v48, %v5091_v42 }
 0x2d7   : > { %v1986_v5 = vadd.f32 %v1954_v56, %v1791_v52  ;;  %v5092_v56 = vld [vmem:[#allocation77_spill] sm:$0xff] }
 0x2d8   : > { %v1928_v3 = vpop.permute.xlu1 %1927  ;;  %vm854_vm8 = vcmp.eq.s32.totalorder %v3686_v48, %v5092_v56 }
 0x2d9   : > { %v1970_v0 = vmul.f32 %v4005_v34, %v1928_v3  ;;  %2642 = vmatmul.mubr.msk.f32.gmra.mrb[24].mxu0 %vm2012_vm13, %v1986_v5  ;;  %v2576_v5 = vsel %vm598_vm7, 1.0, %v4932_v32  ;;  %v1761_v3 = vmul.f32 %v3964_v46, %v1677_v1  ;;  %v2608_v37 = vsel %vm854_vm8, 1.0, %v4932_v32 }
 0x2da   : > { %2251 = vmatprep.mubr.f32.mxu0 %v4932_v32 }
 0x2db   : > { %v2002_v31 = vadd.f32 %v1970_v0, %v1807_v33  ;;  %v2175_v47 = vpop.f32.mrb[0].mxu0 }
 0x2dc   : > { %2366 = vst [vmem:[%s4599_s28] sm:$0xff] %v2175_v47  ;;  %v2177_v28 = vpop.f32.mrb[1].mxu0 }
 0x2dd   : > { %2367 = vst [vmem:[%s4599_s28 + $0x8] sm:$0xff] %v2177_v28  ;;  %v1737_v19 = vpop.permute.xlu1 %1736  ;;  %2658 = vmatmul.mubr.msk.f32.gmra.mrb[24].mxu1 %vm2012_vm13, %v2002_v31 }
 0x2de   : > { %2347 = vmatprep.mubr.f32.mxu1 %v4932_v32  ;;  %v1776_v16 = vmul.f32 %v3964_v46, %v1737_v19  ;;  %v5094_v19 = vld [vmem:[#allocation123_spill] sm:$0xff] }
 0x2df   : > { %v1372_v11 = vmul.f32 %v3952_v55, %v5094_v19 }
 0x2e0   : > { %v1808_v22 = vadd.f32 %v1776_v16, %v4325_v26  ;;  %v5089_v26 = vld [vmem:[#allocation14_spill] sm:$0xff] }
 0x2e1   : > { %vm342_vm6 = vcmp.eq.s32.totalorder %v3686_v48, %v5089_v26  ;;  %v1177_v48 = vmul.f32 %v3836_v36, %v5093_v6 }
 0x2e2   : > { %v1482_v15 = vpop.permute.xlu1 %1481  ;;  %v2544_v25 = vsel %vm342_vm6, 1.0, %v4932_v32 }
 0x2e3   : > { %v2271_v60 = vpop.f32.mrb[0].mxu1  ;;  %v1566_v20 = vmul.f32 %v4013_v45, %v1482_v15  ;;  %v438_v50 = vadd.f32 %v2544_v25, %v3706_v53 }
 0x2e4   : > { %2398 = vst [vmem:[%s4599_s28 + $0x100] sm:$0xff] %v2271_v60  ;;  %v2273_v54 = vpop.f32.mrb[1].mxu1  ;;  %v1940_v60 = vpop.permute.xlu0 %1939 }
 0x2e5   : > { %2399 = vst [vmem:[%s4599_s28 + $0x108] sm:$0xff] %v2273_v54  ;;  %v1598_v7 = vadd.f32 %v1566_v20, %v1403_v41  ;;  %v694_v0 = vadd.f32 %v2576_v5, %v438_v50 }
 0x2e7   : > { %v1868_v51 = vpop.permute.xlu1 %1867  ;;  %v2277_v13 = vpop.f32.mrb[2].mxu1  ;;  %v1793_v31 = vadd.f32 %v1761_v3, %v1598_v7  ;;  %v950_v12 = vadd.f32 %v2608_v37, %v694_v0 }
 0x2e8   : > { %v1955_v39 = vmul.f32 %v4005_v34, %v1868_v51  ;;  %2400 = vst [vmem:[%s4599_s28 + $0x110] sm:$0xff] %v2277_v13  ;;  %v2279_v17 = vpop.f32.mrb[3].mxu1  ;;  %v1973_v51 = vmul.f32 %v4005_v34, %v1940_v60 }
 0x2e9   : > { %2401 = vst [vmem:[%s4599_s28 + $0x118] sm:$0xff] %v2279_v17  ;;  %v1209_v2 = vadd.f32 %v1177_v48, %v950_v12 }
 0x2ea   : > { %v1987_v27 = vadd.f32 %v1955_v39, %v1792_v62  ;;  %v1762_v39 = vmul.f32 %v3964_v46, %v1681_v29 }
 0x2eb   : > { %v1932_v10 = vpop.permute.xlu1 %1931  ;;  %v1404_v55 = vadd.f32 %v1372_v11, %v1209_v2 }
 0x2ec   : > { %v1971_v24 = vmul.f32 %v4005_v34, %v1932_v10  ;;  %2643 = vmatmul.mubr.msk.f32.gmra.mrb[26].mxu0 %vm2012_vm13, %v1987_v27 }
 0x2ed   : > { %2257 = vmatprep.mubr.f32.mxu0 %v4932_v32 }
 0x2ee   : > { %v2003_v40 = vadd.f32 %v1971_v24, %v1808_v22 }
 0x2f0   : > { %v1741_v49 = vpop.permute.xlu1 %1740  ;;  %2659 = vmatmul.mubr.msk.f32.gmra.mrb[26].mxu1 %vm2012_vm13, %v2003_v40 }
 0x2f1   : > { %2353 = vmatprep.mubr.f32.mxu1 %v4932_v32  ;;  %v1777_v35 = vmul.f32 %v3964_v46, %v1741_v49 }
 0x2f2   : > { %v2181_v43 = vpop.f32.mrb[2].mxu0 }
 0x2f3   : > { %2368 = vst [vmem:[%s4599_s28 + $0x10] sm:$0xff] %v2181_v43  ;;  %v2183_v58 = vpop.f32.mrb[3].mxu0  ;;  %v1809_v61 = vadd.f32 %v1777_v35, %v4347_v59 }
 0x2f4   : > { %2369 = vst [vmem:[%s4599_s28 + $0x18] sm:$0xff] %v2183_v58 }
 0x2f5   : > { %v1486_v52 = vpop.permute.xlu1 %1485 }
 0x2f6   : > { %v1567_v36 = vmul.f32 %v4013_v45, %v1486_v52 }
 0x2f8   : > { %v1599_v45 = vadd.f32 %v1567_v36, %v1404_v55 }
 0x2fa   : > { %v1872_v33 = vpop.permute.xlu1 %1871  ;;  %v1794_v10 = vadd.f32 %v1762_v39, %v1599_v45 }
 0x2fb   : > { %v1956_v47 = vmul.f32 %v4005_v34, %v1872_v33 }
 0x2fd   : > { %v1988_v28 = vadd.f32 %v1956_v47, %v1793_v31 }
 0x2fe   : > { %v1936_v53 = vpop.permute.xlu1 %1935 }
 0x2ff   : > { %v1972_v4 = vmul.f32 %v4005_v34, %v1936_v53  ;;  %2644 = vmatmul.mubr.msk.f32.gmra.mrb[28].mxu0 %vm2012_vm13, %v1988_v28 }
 0x300   : > { %v2187_v21 = vpop.f32.mrb[4].mxu0  ;;  %2263 = vmatprep.mubr.f32.mxu0 %v4932_v32 }
 0x301   : > { %v2004_v63 = vadd.f32 %v1972_v4, %v1809_v61  ;;  %2370 = vst [vmem:[%s4599_s28 + $0x20] sm:$0xff] %v2187_v21  ;;  %v2189_v15 = vpop.f32.mrb[5].mxu0 }
 0x302   : > { %2371 = vst [vmem:[%s4599_s28 + $0x28] sm:$0xff] %v2189_v15 }
 0x303   : > { %v1745_v59 = vpop.permute.xlu1 %1744  ;;  %2660 = vmatmul.mubr.msk.f32.gmra.mrb[28].mxu1 %vm2012_vm13, %v2004_v63 }
 0x304   : > { %v1778_v57 = vmul.f32 %v3964_v46, %v1745_v59  ;;  %v2193_v44 = vpop.f32.mrb[6].mxu0  ;;  %v2283_v54 = vpop.f32.mrb[4].mxu1  ;;  %2359 = vmatprep.mubr.f32.mxu1 %v4932_v32 }
 0x305   : > { %2372 = vst [vmem:[%s4599_s28 + $0x30] sm:$0xff] %v2193_v44  ;;  %2402 = vst [vmem:[%s4599_s28 + $0x120] sm:$0xff] %v2283_v54  ;;  %v2195_v13 = vpop.f32.mrb[7].mxu0  ;;  %v2285_v62 = vpop.f32.mrb[5].mxu1 }
 0x306   : > { %v1810_v16 = vadd.f32 %v1778_v57, %v4366_v18  ;;  %2373 = vst [vmem:[%s4599_s28 + $0x38] sm:$0xff] %v2195_v13  ;;  %2403 = vst [vmem:[%s4599_s28 + $0x128] sm:$0xff] %v2285_v62 }
 0x308   : > { %v2005_v17 = vadd.f32 %v1973_v51, %v1810_v16  ;;  %v1876_v27 = vpop.permute.xlu1 %1875 }
 0x309   : > { %v1957_v32 = vmul.f32 %v4005_v34, %v1876_v27 }
 0x30a   : > { %2661 = vmatmul.mubr.msk.f32.gmra.mrb[30].mxu1 %vm2012_vm13, %v2005_v17 }
 0x30b   : > { %v1989_v22 = vadd.f32 %v1957_v32, %v1794_v10 }
 0x30d   : > { %2645 = vmatmul.mubr.msk.f32.gmra.mrb[30].mxu0 %vm2012_vm13, %v1989_v22 }
 0x313   : > { %v2289_v18 = vpop.f32.mrb[6].mxu1 }
 0x314   : > { %2404 = vst [vmem:[%s4599_s28 + $0x130] sm:$0xff] %v2289_v18  ;;  %v2291_v24 = vpop.f32.mrb[7].mxu1 }
 0x315   : > { %2405 = vst [vmem:[%s4599_s28 + $0x138] sm:$0xff] %v2291_v24 }
 0x317   : > { %v2295_v46 = vpop.f32.mrb[8].mxu1 }
 0x318   : > { %2406 = vst [vmem:[%s4599_s28 + $0x140] sm:$0xff] %v2295_v46  ;;  %v2297_v40 = vpop.f32.mrb[9].mxu1 }
 0x319   : > { %2407 = vst [vmem:[%s4599_s28 + $0x148] sm:$0xff] %v2297_v40 }
 0x322   : > { %v2199_v34 = vpop.f32.mrb[8].mxu0 }
 0x323   : > { %2374 = vst [vmem:[%s4599_s28 + $0x40] sm:$0xff] %v2199_v34  ;;  %v2201_v23 = vpop.f32.mrb[9].mxu0 }
 0x324   : > { %2375 = vst [vmem:[%s4599_s28 + $0x48] sm:$0xff] %v2201_v23 }
 0x330   : > { %v2205_v14 = vpop.f32.mrb[10].mxu0 }
 0x331   : > { %2376 = vst [vmem:[%s4599_s28 + $0x50] sm:$0xff] %v2205_v14  ;;  %v2207_v49 = vpop.f32.mrb[11].mxu0 }
 0x332   : > { %2377 = vst [vmem:[%s4599_s28 + $0x58] sm:$0xff] %v2207_v49 }
 0x334   : > { %v2211_v8 = vpop.f32.mrb[12].mxu0  ;;  %v2301_v30 = vpop.f32.mrb[10].mxu1 }
 0x335   : > { %2378 = vst [vmem:[%s4599_s28 + $0x60] sm:$0xff] %v2211_v8  ;;  %2408 = vst [vmem:[%s4599_s28 + $0x150] sm:$0xff] %v2301_v30  ;;  %v2213_v43 = vpop.f32.mrb[13].mxu0  ;;  %v2303_v26 = vpop.f32.mrb[11].mxu1 }
 0x336   : > { %2379 = vst [vmem:[%s4599_s28 + $0x68] sm:$0xff] %v2213_v43  ;;  %2409 = vst [vmem:[%s4599_s28 + $0x158] sm:$0xff] %v2303_v26 }
 0x343   : > { %v2307_v9 = vpop.f32.mrb[12].mxu1 }
 0x344   : > { %2410 = vst [vmem:[%s4599_s28 + $0x160] sm:$0xff] %v2307_v9  ;;  %v2309_v38 = vpop.f32.mrb[13].mxu1 }
 0x345   : > { %2411 = vst [vmem:[%s4599_s28 + $0x168] sm:$0xff] %v2309_v38 }
 0x347   : > { %v2313_v20 = vpop.f32.mrb[14].mxu1 }
 0x348   : > { %2412 = vst [vmem:[%s4599_s28 + $0x170] sm:$0xff] %v2313_v20  ;;  %v2315_v58 = vpop.f32.mrb[15].mxu1 }
 0x349   : > { %2413 = vst [vmem:[%s4599_s28 + $0x178] sm:$0xff] %v2315_v58 }
 0x352   : > { %v2217_v42 = vpop.f32.mrb[14].mxu0 }
 0x353   : > { %2380 = vst [vmem:[%s4599_s28 + $0x70] sm:$0xff] %v2217_v42  ;;  %v2219_v41 = vpop.f32.mrb[15].mxu0 }
 0x354   : > { %2381 = vst [vmem:[%s4599_s28 + $0x78] sm:$0xff] %v2219_v41 }
 0x360   : > { %v2223_v52 = vpop.f32.mrb[16].mxu0 }
 0x361   : > { %2382 = vst [vmem:[%s4599_s28 + $0x80] sm:$0xff] %v2223_v52  ;;  %v2225_v25 = vpop.f32.mrb[17].mxu0 }
 0x362   : > { %2383 = vst [vmem:[%s4599_s28 + $0x88] sm:$0xff] %v2225_v25 }
 0x364   : > { %v2319_v56 = vpop.f32.mrb[16].mxu1 }
 0x365   : > { %2414 = vst [vmem:[%s4599_s28 + $0x180] sm:$0xff] %v2319_v56  ;;  %v2321_v1 = vpop.f32.mrb[17].mxu1 }
 0x366   : > { %2415 = vst [vmem:[%s4599_s28 + $0x188] sm:$0xff] %v2321_v1 }
 0x373   : > { %v2229_v7 = vpop.f32.mrb[18].mxu0 }
 0x374   : > { %2384 = vst [vmem:[%s4599_s28 + $0x90] sm:$0xff] %v2229_v7  ;;  %v2231_v5 = vpop.f32.mrb[19].mxu0 }
 0x375   : > { %2385 = vst [vmem:[%s4599_s28 + $0x98] sm:$0xff] %v2231_v5 }
 0x377   : > { %v2325_v50 = vpop.f32.mrb[18].mxu1 }
 0x378   : > { %2416 = vst [vmem:[%s4599_s28 + $0x190] sm:$0xff] %v2325_v50  ;;  %v2327_v3 = vpop.f32.mrb[19].mxu1 }
 0x379   : > { %2417 = vst [vmem:[%s4599_s28 + $0x198] sm:$0xff] %v2327_v3 }
 0x386   : > { %v2235_v37 = vpop.f32.mrb[20].mxu0 }
 0x387   : > { %2386 = vst [vmem:[%s4599_s28 + $0xa0] sm:$0xff] %v2235_v37  ;;  %v2237_v33 = vpop.f32.mrb[21].mxu0 }
 0x388   : > { %2387 = vst [vmem:[%s4599_s28 + $0xa8] sm:$0xff] %v2237_v33 }
 0x38a   : > { %v2331_v0 = vpop.f32.mrb[20].mxu1 }
 0x38b   : > { %2418 = vst [vmem:[%s4599_s28 + $0x1a0] sm:$0xff] %v2331_v0  ;;  %v2333_v35 = vpop.f32.mrb[21].mxu1 }
 0x38c   : > { %2419 = vst [vmem:[%s4599_s28 + $0x1a8] sm:$0xff] %v2333_v35 }
 0x399   : > { %v2241_v31 = vpop.f32.mrb[22].mxu0 }
 0x39a   : > { %2388 = vst [vmem:[%s4599_s28 + $0xb0] sm:$0xff] %v2241_v31  ;;  %v2243_v47 = vpop.f32.mrb[23].mxu0 }
 0x39b   : > { %2389 = vst [vmem:[%s4599_s28 + $0xb8] sm:$0xff] %v2243_v47 }
 0x39d   : > { %v2337_v6 = vpop.f32.mrb[22].mxu1 }
 0x39e   : > { %2420 = vst [vmem:[%s4599_s28 + $0x1b0] sm:$0xff] %v2337_v6  ;;  %v2339_v48 = vpop.f32.mrb[23].mxu1 }
 0x39f   : > { %2421 = vst [vmem:[%s4599_s28 + $0x1b8] sm:$0xff] %v2339_v48 }
 0x3ac   : > { %v2247_v12 = vpop.f32.mrb[24].mxu0 }
 0x3ad   : > { %2390 = vst [vmem:[%s4599_s28 + $0xc0] sm:$0xff] %v2247_v12  ;;  %v2249_v29 = vpop.f32.mrb[25].mxu0 }
 0x3ae   : > { %2391 = vst [vmem:[%s4599_s28 + $0xc8] sm:$0xff] %v2249_v29 }
 0x3b0   : > { %v2343_v28 = vpop.f32.mrb[24].mxu1 }
 0x3b1   : > { %2422 = vst [vmem:[%s4599_s28 + $0x1c0] sm:$0xff] %v2343_v28  ;;  %v2345_v53 = vpop.f32.mrb[25].mxu1 }
 0x3b2   : > { %2423 = vst [vmem:[%s4599_s28 + $0x1c8] sm:$0xff] %v2345_v53 }
 0x3bf   : > { %v2253_v19 = vpop.f32.mrb[26].mxu0 }
 0x3c0   : > { %2392 = vst [vmem:[%s4599_s28 + $0xd0] sm:$0xff] %v2253_v19  ;;  %v2255_v11 = vpop.f32.mrb[27].mxu0 }
 0x3c1   : > { %2393 = vst [vmem:[%s4599_s28 + $0xd8] sm:$0xff] %v2255_v11 }
 0x3c3   : > { %v2349_v61 = vpop.f32.mrb[26].mxu1 }
 0x3c4   : > { %2424 = vst [vmem:[%s4599_s28 + $0x1d0] sm:$0xff] %v2349_v61  ;;  %v2351_v4 = vpop.f32.mrb[27].mxu1 }
 0x3c5   : > { %2425 = vst [vmem:[%s4599_s28 + $0x1d8] sm:$0xff] %v2351_v4 }
 0x3d2   : > { %v2259_v21 = vpop.f32.mrb[28].mxu0 }
 0x3d3   : > { %2394 = vst [vmem:[%s4599_s28 + $0xe0] sm:$0xff] %v2259_v21  ;;  %v2261_v2 = vpop.f32.mrb[29].mxu0 }
 0x3d4   : > { %2395 = vst [vmem:[%s4599_s28 + $0xe8] sm:$0xff] %v2261_v2 }
 0x3d6   : > { %v2355_v36 = vpop.f32.mrb[28].mxu1 }
 0x3d7   : > { %2426 = vst [vmem:[%s4599_s28 + $0x1e0] sm:$0xff] %v2355_v36  ;;  %v2357_v63 = vpop.f32.mrb[29].mxu1 }
 0x3d8   : > { %2427 = vst [vmem:[%s4599_s28 + $0x1e8] sm:$0xff] %v2357_v63 }
 0x3dd   : > { %v2361_v15 = vpop.f32.mrb[30].mxu1 }
 0x3de   : > { %2428 = vst [vmem:[%s4599_s28 + $0x1f0] sm:$0xff] %v2361_v15  ;;  %v2363_v60 = vpop.f32.mrb[31].mxu1 }
 0x3df   : > { %2429 = vst [vmem:[%s4599_s28 + $0x1f8] sm:$0xff] %v2363_v60 }
 0x3e0   : > { %v2265_v55 = vpop.f32.mrb[30].mxu0 }
 0x3e1   : > { %2396 = vst [vmem:[%s4599_s28 + $0xf0] sm:$0xff] %v2265_v55  ;;  %v2267_v59 = vpop.f32.mrb[31].mxu0 }
 0x3e2   : > { %2397 = vst [vmem:[%s4599_s28 + $0xf8] sm:$0xff] %v2267_v59 }
 0x3e3   : > { %2814 = shalt.err (!%p2811_p3)
}
 0x3e4   : > { %s2815_s11 = scalar_lea.hbm %s4719_s6, 8192  ;;  %s2819_s20 = scalar_lea.hbm %s4771_s3, 16384 }
 0x3e5   : > { %p2816_p4 = scmp.ne.s32.totalorder %s4719_s6, %s2815_s11  ;;  %p2820_p9 = scmp.lt.u32.totalorder %s4719_s6, %s4771_s3 }
 0x3e6   : > { %p2821_p10 = scmp.lt.u32.totalorder %s2819_s20, %s2815_s11  ;;  %p2823_p12 = scmp.lt.u32.totalorder %s2815_s11, %s4719_s6 }
 0x3e7   : > { %p2817_p7 = pnand %p2816_p4, %p2932_p5 }
 0x3e8   : > { %p2822_p11 = por %p2821_p10, %p2820_p9 }
 0x3e9   : > { %p2818_p8 = pneg %p2817_p7 }
 0x3ea   : > { %p2824_p13 = por %p2823_p12, %p2822_p11 }
 0x3ec   : > { %p2825_p0 = pnand %p2824_p13, %p2818_p8 }
 0x3ee   : > { %2828 = shalt.err (!%p2825_p0)
}
 0x3ef   : > { %s2872_s26 = smov 256   ;;  %s2873_s27 = smov 16  }
 0x3f0   : > { %2678 = dma.vmem_to_hbm [thread:$0]  (%p2932_p5), %s4721_s30, 8192, %s4719_s6, %s4727_s16, %s2872_s26, %s2872_s26, %s2873_s27  }
 0x3f1 PF: > { %p2684_p1 = scmp.ge.s32.totalorder %s2863_s15, 2  ;;  %s2460_s28 = sand.u32 1, %s2851_s12  }
 0x3f2   : > { %s2461_s29 = scalar_lea.sflag [#allocation3], %s2460_s28 }
 0x3f3   : > { %p2681_p2 = pnand %p2684_p1, %p2936_p6 }
 0x3f5   : > { %2846 = dma.done.wait (!%p2681_p2), %s2461_s29, 8192  }
 0x3f6   : > { %2848 = vsyncadd (!%p2681_p2), %s2461_s29, 4294959104  ;;  %p13_p3 = scmp.ge.s32.totalorder %s2919_s18, 4   ;;  %s5095_s12 = smov %s2855_s13 }
 0x3f7   : > { %s5096_s13 = smov %s2859_s14  ;;  %s5097_s14 = smov %s2930_s21 }
 0x3f8   : > { %s5098_s15 = smov %s2919_s18  ;;  %15 = sbr.rel (!%p13_p3) target bundleno = 3 (0x3), region = 70 }
 0x3ff   :  { %2466 = vsyncpa [#allocation3], 1 }
 0x400   :  { %2468 = vsyncpa [#allocation3 + $0x1], 1 }

</bundles_post_ra>
